<compile_context>
chip_gen: v5e
topology: v5e:2x2
jax: 0.10.0
libtpu: 0.0.40
codegen_flags: <defaults>
</compile_context>

<pallas_src>
import jax
import jax.numpy as jnp
from jax.experimental import pallas as pl
from jax.experimental.pallas import tpu as pltpu

# ----------------------------- problem sizes -------------------------------
B = 2            # batch
C_IN = 3         # input channels (RGB frame)
H_IN = W_IN = 16
K = 3            # conv kernel
STRIDE = 2
C_OUT = 16       # encoder feature channels (cube depth D)
NH = 32          # hidden size (down-scaled from the module's 1024)
N_ACT = 3        # number of actions produced by Control

H_OUT = (H_IN - K) // STRIDE + 1      # 7
W_OUT = (W_IN - K) // STRIDE + 1      # 7
L = H_OUT * W_OUT                     # 49 spatial positions
D = C_OUT
M = B * L                             # 98 total (batch, position) rows
M_PAD = 128                           # padded row count (lane-dense attention row)
KC = C_IN * K * K                     # 27 filter taps
KC_PAD = 32                           # padded contraction dim for the encoder
Y_PAD = 128 - 2 * NH                  # 64 lanes reserved for the control output

assert M <= M_PAD
assert 4 * NH == 128                  # gate row is exactly one vreg lane width
assert N_ACT <= Y_PAD                 # packed output fits one 128-lane row


# ------------------------------- glue: im2col ------------------------------
def im2col(x, k, stride):
    """x: [N, C, H, W] (NCHW) -> patches [N*Ho*Wo, C*k*k] (batch-major rows)."""
    n, c, h, w = x.shape
    ho = (h - k) // stride + 1
    wo = (w - k) // stride + 1
    taps = []
    for i in range(k):
        for j in range(k):
            taps.append(x[:, :, i:i + stride * ho:stride, j:j + stride * wo:stride])
    p = jnp.stack(taps, axis=2)                 # [N, C, k*k, Ho, Wo]
    p = p.transpose(0, 3, 4, 1, 2)              # [N, Ho, Wo, C, k*k]
    return p.reshape(n * ho * wo, c * k * k), ho, wo


# --------------- fused Encoder + Attention + LSTM + Control kernel ----------
def fused_kernel(p_ref, we_ref, be_ref, h0_ref, c0_ref,
                 wf_ref, wh_ref, va_ref,
                 wlx_ref, wlh_ref, bl_ref,
                 w1x_ref, w1h_ref, b1_ref, w2_ref, b2_ref,
                 out_ref, attn_ref, h_sc, c_sc):
    f32 = jnp.float32
    t = pl.program_id(0)

    # load the recurrent state (initialized from inputs on the first step)
    @pl.when(t == 0)
    def _():
        h_sc[...] = h0_ref[...]
        c_sc[...] = c0_ref[...]

    h_prev = h_sc[...]                                              # (B, NH)
    c_prev = c_sc[...]                                              # (B, NH)

    # ---- encoder: feat = relu(patches @ W + b), all B*L rows at once -------
    feat = jnp.maximum(
        jnp.dot(p_ref[0], we_ref[...], preferred_element_type=f32) + be_ref[...],
        0.0)                                                        # (M_PAD, D)

    # ---- per-batch segment masks (built from iota, no extra HBM input) -----
    m_bm = jax.lax.broadcasted_iota(jnp.int32, (B, M_PAD), 1)
    b_bm = jax.lax.broadcasted_iota(jnp.int32, (B, M_PAD), 0)
    seg_bm = jnp.logical_and(m_bm >= b_bm * L, m_bm < (b_bm + 1) * L)   # (B, M_PAD)
    m_mb = jax.lax.broadcasted_iota(jnp.int32, (M_PAD, B), 0)
    b_mb = jax.lax.broadcasted_iota(jnp.int32, (M_PAD, B), 1)
    onehot_mb = jnp.logical_and(m_mb >= b_mb * L,
                                m_mb < (b_mb + 1) * L).astype(f32)      # (M_PAD, B)

    # ---- additive attention: alpha = softmax_l(v^T tanh(F Wf + h Wh)) ------
    hproj = jnp.dot(h_prev, wh_ref[...], preferred_element_type=f32)    # (B, NH)
    hproj_full = jnp.dot(onehot_mb, hproj,
                         preferred_element_type=f32)                    # (M_PAD, NH)
    proj = jnp.tanh(
        jnp.dot(feat, wf_ref[...], preferred_element_type=f32) + hproj_full)

    # lane-dense score row; contract on dim 1 of both operands (no proj.T)
    scores = jax.lax.dot_general(
        va_ref[...], proj,
        dimension_numbers=(((1,), (1,)), ((), ())),
        preferred_element_type=f32)                                     # (1, M_PAD)

    # per-segment softmax (robust: per-batch max, exact normalization)
    big_neg = jnp.float32(-1e30)
    scores_seg = jnp.where(seg_bm, scores, big_neg)                     # (B, M_PAD)
    seg_max = jnp.max(scores_seg, axis=1, keepdims=True)                # (B, 1)
    e = jnp.exp(scores_seg - seg_max)       # padded / foreign lanes underflow to 0
    denom = jnp.sum(e, axis=1, keepdims=True)                           # (B, 1)
    alpha = e / denom                                                   # (B, M_PAD)
    ctx = jnp.dot(alpha, feat, preferred_element_type=f32)              # (B, D)

    # ---- LSTM cell: two small dots (ctx path + h path), no VMEM scratch ----
    gates = (jnp.dot(ctx, wlx_ref[...], preferred_element_type=f32)
             + jnp.dot(h_prev, wlh_ref[...], preferred_element_type=f32)
             + bl_ref[...])                                             # (B, 4*NH)
    i_g = jax.nn.sigmoid(gates[:, 0 * NH:1 * NH])
    f_g = jax.nn.sigmoid(gates[:, 1 * NH:2 * NH])
    g_g = jnp.tanh(gates[:, 2 * NH:3 * NH])
    o_g = jax.nn.sigmoid(gates[:, 3 * NH:4 * NH])
    c_new = f_g * c_prev + i_g * g_g
    h_new = o_g * jnp.tanh(c_new)
    h_sc[...] = h_new
    c_sc[...] = c_new

    # ---- control head: two small dots; w2/b2 pre-padded to Y_PAD lanes -----
    hid = jnp.maximum(
        jnp.dot(ctx, w1x_ref[...], preferred_element_type=f32)
        + jnp.dot(h_new, w1h_ref[...], preferred_element_type=f32)
        + b1_ref[...], 0.0)                                             # (B, NH)
    y_wide = (jnp.dot(hid, w2_ref[...], preferred_element_type=f32)
              + b2_ref[...])                                            # (B, Y_PAD)

    # ---- single unmasked lane-dense stores ---------------------------------
    out_ref[0] = jnp.concatenate([h_new, c_new, y_wide], axis=-1)       # (B, 128)
    attn_ref[0] = jnp.sum(alpha, axis=0, keepdims=True)                 # (1, M_PAD)


def _const_spec(shape):
    n = len(shape)
    return pl.BlockSpec(shape, lambda t, n=n: (0,) * n)


def _fused_call(patches_pad, pp, h0, c0):
    T = patches_pad.shape[0]
    ins = [patches_pad, pp['w_enc_pad'], pp['b_enc'], h0, c0,
           pp['wf'], pp['wh'], pp['va_row'],
           pp['wlx'], pp['wlh'], pp['bl'],
           pp['w1x'], pp['w1h'], pp['b1'], pp['w2_pad'], pp['b2_pad']]
    in_specs = ([pl.BlockSpec((1, M_PAD, KC_PAD), lambda t: (t, 0, 0))]
                + [_const_spec(a.shape) for a in ins[1:]])
    return pl.pallas_call(
        fused_kernel,
        out_shape=(jax.ShapeDtypeStruct((T, B, 128), jnp.float32),
                   jax.ShapeDtypeStruct((T, 1, M_PAD), jnp.float32)),
        grid=(T,),
        in_specs=in_specs,
        out_specs=(pl.BlockSpec((1, B, 128), lambda t: (t, 0, 0)),
                   pl.BlockSpec((1, 1, M_PAD), lambda t: (t, 0, 0))),
        scratch_shapes=[pltpu.VMEM((B, NH), jnp.float32),   # h carry
                        pltpu.VMEM((B, NH), jnp.float32)],  # c carry
        compiler_params=pltpu.CompilerParams(
            dimension_semantics=("arbitrary",)),             # recurrent axis
    )(*ins)


# --------------------------- one-time param prep ----------------------------
def prepare_params(params):
    """Hoisted layout plumbing: run ONCE, not per forward step."""
    pp = dict(params)
    pp['w_enc_pad'] = (jnp.zeros((KC_PAD, C_OUT), jnp.float32)
                       .at[:KC, :].set(params['w_enc']))
    pp['va_row'] = params['va'].reshape(1, NH)
    pp['w2_pad'] = (jnp.zeros((NH, Y_PAD), jnp.float32)
                    .at[:, :N_ACT].set(params['w2']))
    pp['b2_pad'] = (jnp.zeros((1, Y_PAD), jnp.float32)
                    .at[:, :N_ACT].set(params['b2']))
    return pp


# ------------------------------ full forward --------------------------------
def experimental_forward_sequence(pp, frames, state=None):
    """frames: [T, B, C, H, W] float32; state: optional (h0, c0), each [B, NH]."""
    T = frames.shape[0]
    assert frames.shape[1] == B
    patches, ho, wo = im2col(frames.reshape(T * B, C_IN, H_IN, W_IN), K, STRIDE)
    patches = patches.reshape(T, B * L, KC)
    patches_pad = jnp.pad(patches, ((0, 0), (0, M_PAD - B * L), (0, KC_PAD - KC)))

    if state is None:
        h0 = jnp.zeros((B, NH), jnp.float32)
        c0 = jnp.zeros((B, NH), jnp.float32)
    else:
        h0, c0 = state

    packed, attn_rows = _fused_call(patches_pad, pp, h0, c0)

    y_seq = packed[:, :, 2 * NH:2 * NH + N_ACT]                  # (T, B, N_ACT)
    attn = attn_rows[:, 0, :B * L].reshape(T, B, ho, wo)         # (T, B, Ho, Wo)
    h_last = packed[-1, :, :NH]
    c_last = packed[-1, :, NH:2 * NH]
    # TODO(synk): the original module returns the decoder's `lstm` state as
    # 'hidden'; here the new LSTM hidden state (and cell state) are returned.
    return {'actions': y_seq, 'attention': attn, 'hidden': h_last, 'cell': c_last}


def experimental_forward(pp, frame, state=None):
    """Single module step (matches the PyTorch forward): frame [B, C, H, W]."""
    seq = experimental_forward_sequence(pp, frame[None], state)
    return {'actions': seq['actions'][0], 'attention': seq['attention'][0],
            'hidden': seq['hidden'], 'cell': seq['cell']}


# ---------------------------- pure-JAX reference -----------------------------
def ref_step(params, frame, h0, c0):
    patches, ho, wo = im2col(frame, K, STRIDE)
    feat = jnp.maximum(patches @ params['w_enc'] + params['b_enc'], 0.0)
    feat = feat.reshape(B, L, C_OUT)
    proj = jnp.tanh(jnp.einsum('bld,dn->bln', feat, params['wf'])
                    + (h0 @ params['wh'])[:, None, :])
    scores = jnp.einsum('bln,nk->bl', proj, params['va'])
    alpha = jax.nn.softmax(scores, axis=-1)
    ctx = jnp.einsum('bl,bld->bd', alpha, feat)
    gates = ctx @ params['wlx'] + h0 @ params['wlh'] + params['bl']
    i_g = jax.nn.sigmoid(gates[:, 0 * NH:1 * NH])
    f_g = jax.nn.sigmoid(gates[:, 1 * NH:2 * NH])
    g_g = jnp.tanh(gates[:, 2 * NH:3 * NH])
    o_g = jax.nn.sigmoid(gates[:, 3 * NH:4 * NH])
    c_new = f_g * c0 + i_g * g_g
    h_new = o_g * jnp.tanh(c_new)
    hid = jnp.maximum(ctx @ params['w1x'] + h_new @ params['w1h'] + params['b1'], 0.0)
    y = hid @ params['w2'] + params['b2']
    return y, alpha.reshape(B, ho, wo), h_new, c_new


def ref_forward_sequence(params, frames, state=None):
    T = frames.shape[0]
    h = jnp.zeros((B, NH), jnp.float32) if state is None else state[0]
    c = jnp.zeros((B, NH), jnp.float32) if state is None else state[1]
    ys, attns = [], []
    for t in range(T):
        y, a, h, c = ref_step(params, frames[t], h, c)
        ys.append(y)
        attns.append(a)
    return {'actions': jnp.stack(ys), 'attention': jnp.stack(attns),
            'hidden': h, 'cell': c}


# -------------------------------- params ------------------------------------
def init_params(key):
    ks = jax.random.split(key, 12)
    s = 0.1
    return {
        'w_enc': s * jax.random.normal(ks[0], (C_IN * K * K, C_OUT), jnp.float32),
        'b_enc': s * jax.random.normal(ks[1], (1, C_OUT), jnp.float32),
        'wf':    s * jax.random.normal(ks[2], (C_OUT, NH), jnp.float32),
        'wh':    s * jax.random.normal(ks[3], (NH, NH), jnp.float32),
        'va':    s * jax.random.normal(ks[4], (NH, 1), jnp.float32),
        'wlx':   s * jax.random.normal(ks[5], (C_OUT, 4 * NH), jnp.float32),
        'wlh':   s * jax.random.normal(ks[6], (NH, 4 * NH), jnp.float32),
        'bl':    s * jax.random.normal(ks[7], (1, 4 * NH), jnp.float32),
        'w1x':   s * jax.random.normal(ks[8], (C_OUT, NH), jnp.float32),
        'w1h':   s * jax.random.normal(ks[9], (NH, NH), jnp.float32),
        'b1':    s * jax.random.normal(ks[10], (1, NH), jnp.float32),
        'w2':    s * jax.random.normal(ks[11], (NH, N_ACT), jnp.float32),
        'b2':    jnp.zeros((1, N_ACT), jnp.float32),
    }


if __name__ == "__main__":
    key = jax.random.PRNGKey(0)
    pkey, fkey, hkey, ckey = jax.random.split(key, 4)
    params = init_params(pkey)
    pp = prepare_params(params)          # one-time layout plumbing

    T = 4
    frames = jax.random.normal(fkey, (T, B, C_IN, H_IN, W_IN), jnp.float32)
    h0 = 0.1 * jax.random.normal(hkey, (B, NH), jnp.float32)
    c0 = 0.1 * jax.random.normal(ckey, (B, NH), jnp.float32)

    # sequence forward (LSTM state carried in VMEM across grid=(T,) steps)
    run_seq = jax.jit(experimental_forward_sequence)
    out = jax.block_until_ready(run_seq(pp, frames, (h0, c0)))
    ref = ref_forward_sequence(params, frames, (h0, c0))
    for k in ('actions', 'attention', 'hidden', 'cell'):
        assert out[k].shape == ref[k].shape, (k, out[k].shape, ref[k].shape)
        assert bool(jnp.all(jnp.isfinite(out[k]))), k
        assert bool(jnp.allclose(out[k], ref[k], atol=2e-2, rtol=2e-2)), k

    # single-step forward (the original module's forward = one frame batch)
    run_one = jax.jit(experimental_forward)
    out1 = jax.block_until_ready(run_one(pp, frames[0]))
    ref1 = ref_forward_sequence(params, frames[:1], None)
    assert bool(jnp.allclose(out1['actions'], ref1['actions'][0], atol=2e-2, rtol=2e-2))
    assert bool(jnp.allclose(out1['attention'], ref1['attention'][0], atol=2e-2, rtol=2e-2))
    assert bool(jnp.allclose(out1['hidden'], ref1['hidden'], atol=2e-2, rtol=2e-2))

    print("KERNEL_OK")
</pallas_src>

<mosaic_0001>
module attributes {stable_mosaic.version = 11 : i64} {
  func.func @fused_kernel(%arg0: i32, %arg1: memref<1x128x32xf32, #tpu.memory_space<vmem>>, %arg2: memref<32x16xf32, #tpu.memory_space<vmem>>, %arg3: memref<1x16xf32, #tpu.memory_space<vmem>>, %arg4: memref<2x32xf32, #tpu.memory_space<vmem>>, %arg5: memref<2x32xf32, #tpu.memory_space<vmem>>, %arg6: memref<16x32xf32, #tpu.memory_space<vmem>>, %arg7: memref<32x32xf32, #tpu.memory_space<vmem>>, %arg8: memref<1x32xf32, #tpu.memory_space<vmem>>, %arg9: memref<16x128xf32, #tpu.memory_space<vmem>>, %arg10: memref<32x128xf32, #tpu.memory_space<vmem>>, %arg11: memref<1x128xf32, #tpu.memory_space<vmem>>, %arg12: memref<16x32xf32, #tpu.memory_space<vmem>>, %arg13: memref<32x32xf32, #tpu.memory_space<vmem>>, %arg14: memref<1x32xf32, #tpu.memory_space<vmem>>, %arg15: memref<32x64xf32, #tpu.memory_space<vmem>>, %arg16: memref<1x64xf32, #tpu.memory_space<vmem>>, %arg17: memref<1x2x128xf32, #tpu.memory_space<vmem>>, %arg18: memref<1x1x128xf32, #tpu.memory_space<vmem>>, %arg19: memref<2x32xf32, #tpu.memory_space<vmem>>, %arg20: memref<2x32xf32, #tpu.memory_space<vmem>>) attributes {dimension_semantics = [#tpu.dimension_semantics<arbitrary>], iteration_bounds = array<i64: 4>, scalar_prefetch = 0 : i64, scratch_operands = 2 : i64, tpu.core_type = #tpu.core_type<tc>, window_params = [{transform_indices = @transform_0, window_bounds = array<i64: 1, 128, 32>}, {pipeline_mode = #tpu.pipeline_mode<synchronous>, transform_indices = @transform_1, window_bounds = array<i64: 32, 16>}, {pipeline_mode = #tpu.pipeline_mode<synchronous>, transform_indices = @transform_2, window_bounds = array<i64: 1, 16>}, {pipeline_mode = #tpu.pipeline_mode<synchronous>, transform_indices = @transform_3, window_bounds = array<i64: 2, 32>}, {pipeline_mode = #tpu.pipeline_mode<synchronous>, transform_indices = @transform_4, window_bounds = array<i64: 2, 32>}, {pipeline_mode = #tpu.pipeline_mode<synchronous>, transform_indices = @transform_5, window_bounds = array<i64: 16, 32>}, {pipeline_mode = #tpu.pipeline_mode<synchronous>, transform_indices = @transform_6, window_bounds = array<i64: 32, 32>}, {pipeline_mode = #tpu.pipeline_mode<synchronous>, transform_indices = @transform_7, window_bounds = array<i64: 1, 32>}, {pipeline_mode = #tpu.pipeline_mode<synchronous>, transform_indices = @transform_8, window_bounds = array<i64: 16, 128>}, {pipeline_mode = #tpu.pipeline_mode<synchronous>, transform_indices = @transform_9, window_bounds = array<i64: 32, 128>}, {pipeline_mode = #tpu.pipeline_mode<synchronous>, transform_indices = @transform_10, window_bounds = array<i64: 1, 128>}, {pipeline_mode = #tpu.pipeline_mode<synchronous>, transform_indices = @transform_11, window_bounds = array<i64: 16, 32>}, {pipeline_mode = #tpu.pipeline_mode<synchronous>, transform_indices = @transform_12, window_bounds = array<i64: 32, 32>}, {pipeline_mode = #tpu.pipeline_mode<synchronous>, transform_indices = @transform_13, window_bounds = array<i64: 1, 32>}, {pipeline_mode = #tpu.pipeline_mode<synchronous>, transform_indices = @transform_14, window_bounds = array<i64: 32, 64>}, {pipeline_mode = #tpu.pipeline_mode<synchronous>, transform_indices = @transform_15, window_bounds = array<i64: 1, 64>}, {transform_indices = @transform_16, window_bounds = array<i64: 1, 2, 128>}, {transform_indices = @transform_17, window_bounds = array<i64: 1, 1, 128>}]} {
    %c0_i32 = arith.constant 0 : i32
    %0 = arith.cmpi eq, %arg0, %c0_i32 : i32
    %1 = arith.extui %0 : i1 to i32
    %c0_i32_0 = arith.constant 0 : i32
    %2 = arith.cmpi ne, %1, %c0_i32_0 : i32
    scf.if %2 {
      %c0_66 = arith.constant 0 : index
      %c0_67 = arith.constant 0 : index
      %120 = vector.load %arg4[%c0_66, %c0_67] : memref<2x32xf32, #tpu.memory_space<vmem>>, vector<2x32xf32>
      %c0_68 = arith.constant 0 : index
      %c0_69 = arith.constant 0 : index
      %121 = vector.load %arg19[%c0_68, %c0_69] : memref<2x32xf32, #tpu.memory_space<vmem>>, vector<2x32xf32>
      tpu.vector_store %arg19[%c0_68, %c0_69], %120 {strides = array<i32>} : memref<2x32xf32, #tpu.memory_space<vmem>>, vector<2x32xf32>,
      %c0_70 = arith.constant 0 : index
      %c0_71 = arith.constant 0 : index
      %122 = vector.load %arg5[%c0_70, %c0_71] : memref<2x32xf32, #tpu.memory_space<vmem>>, vector<2x32xf32>
      %c0_72 = arith.constant 0 : index
      %c0_73 = arith.constant 0 : index
      %123 = vector.load %arg20[%c0_72, %c0_73] : memref<2x32xf32, #tpu.memory_space<vmem>>, vector<2x32xf32>
      tpu.vector_store %arg20[%c0_72, %c0_73], %122 {strides = array<i32>} : memref<2x32xf32, #tpu.memory_space<vmem>>, vector<2x32xf32>,
    } else {
    }
    %c0 = arith.constant 0 : index
    %c0_1 = arith.constant 0 : index
    %3 = vector.load %arg19[%c0, %c0_1] : memref<2x32xf32, #tpu.memory_space<vmem>>, vector<2x32xf32>
    %c0_2 = arith.constant 0 : index
    %c0_3 = arith.constant 0 : index
    %4 = vector.load %arg20[%c0_2, %c0_3] : memref<2x32xf32, #tpu.memory_space<vmem>>, vector<2x32xf32>
    %c0_4 = arith.constant 0 : index
    %c0_5 = arith.constant 0 : index
    %c0_6 = arith.constant 0 : index
    %5 = vector.load %arg1[%c0_4, %c0_5, %c0_6] : memref<1x128x32xf32, #tpu.memory_space<vmem>>, vector<1x128x32xf32>
    %6 = vector.shape_cast %5 : vector<1x128x32xf32> to vector<128x32xf32>
    %c0_7 = arith.constant 0 : index
    %c0_8 = arith.constant 0 : index
    %7 = vector.load %arg2[%c0_7, %c0_8] : memref<32x16xf32, #tpu.memory_space<vmem>>, vector<32x16xf32>
    %cst = arith.constant dense<0.000000e+00> : vector<128x16xf32>
    %8 = tpu.matmul %6, %7, %cst {dimension_numbers = #tpu.dot_dimension_numbers<[1], [0], [0], [1], [0, 0, 1, 1], [], []>} : vector<128x32xf32>, vector<32x16xf32>, vector<128x16xf32> -> vector<128x16xf32>
    %c0_9 = arith.constant 0 : index
    %c0_10 = arith.constant 0 : index
    %9 = vector.load %arg3[%c0_9, %c0_10] : memref<1x16xf32, #tpu.memory_space<vmem>>, vector<1x16xf32>
    %10 = vector.broadcast %9 : vector<1x16xf32> to vector<128x16xf32>
    %11 = arith.addf %8, %10 : vector<128x16xf32>
    %cst_11 = arith.constant 0.000000e+00 : f32
    %12 = vector.broadcast %cst_11 : f32 to vector<128x16xf32>
    %13 = arith.maximumf %11, %12 : vector<128x16xf32>
    %14 = tpu.iota {dimensions = array<i32: 1>} : vector<2x128xi32>
    %15 = tpu.iota {dimensions = array<i32: 0>} : vector<2x128xi32>
    %c49_i32 = arith.constant 49 : i32
    %16 = vector.broadcast %c49_i32 : i32 to vector<2x128xi32>
    %17 = arith.muli %15, %16 : vector<2x128xi32>
    %18 = arith.cmpi sge, %14, %17 : vector<2x128xi32>
    %c1_i32 = arith.constant 1 : i32
    %19 = vector.broadcast %c1_i32 : i32 to vector<2x128xi32>
    %20 = arith.addi %15, %19 : vector<2x128xi32>
    %c49_i32_12 = arith.constant 49 : i32
    %21 = vector.broadcast %c49_i32_12 : i32 to vector<2x128xi32>
    %22 = arith.muli %20, %21 : vector<2x128xi32>
    %23 = arith.cmpi slt, %14, %22 : vector<2x128xi32>
    %24 = arith.andi %18, %23 : vector<2x128xi1>
    %25 = tpu.iota {dimensions = array<i32: 0>} : vector<128x2xi32>
    %26 = tpu.iota {dimensions = array<i32: 1>} : vector<128x2xi32>
    %c49_i32_13 = arith.constant 49 : i32
    %27 = vector.broadcast %c49_i32_13 : i32 to vector<128x2xi32>
    %28 = arith.muli %26, %27 : vector<128x2xi32>
    %29 = arith.cmpi sge, %25, %28 : vector<128x2xi32>
    %c1_i32_14 = arith.constant 1 : i32
    %30 = vector.broadcast %c1_i32_14 : i32 to vector<128x2xi32>
    %31 = arith.addi %26, %30 : vector<128x2xi32>
    %c49_i32_15 = arith.constant 49 : i32
    %32 = vector.broadcast %c49_i32_15 : i32 to vector<128x2xi32>
    %33 = arith.muli %31, %32 : vector<128x2xi32>
    %34 = arith.cmpi slt, %25, %33 : vector<128x2xi32>
    %35 = arith.andi %29, %34 : vector<128x2xi1>
    %36 = arith.extui %35 : vector<128x2xi1> to vector<128x2xi32>
    %37 = arith.sitofp %36 : vector<128x2xi32> to vector<128x2xf32>
    %c0_16 = arith.constant 0 : index
    %c0_17 = arith.constant 0 : index
    %38 = vector.load %arg7[%c0_16, %c0_17] : memref<32x32xf32, #tpu.memory_space<vmem>>, vector<32x32xf32>
    %cst_18 = arith.constant dense<0.000000e+00> : vector<2x32xf32>
    %39 = tpu.matmul %3, %38, %cst_18 {dimension_numbers = #tpu.dot_dimension_numbers<[1], [0], [0], [1], [0, 0, 1, 1], [], []>} : vector<2x32xf32>, vector<32x32xf32>, vector<2x32xf32> -> vector<2x32xf32>
    %cst_19 = arith.constant dense<0.000000e+00> : vector<128x32xf32>
    %40 = tpu.matmul %37, %39, %cst_19 {dimension_numbers = #tpu.dot_dimension_numbers<[1], [0], [0], [1], [0, 0, 1, 1], [], []>} : vector<128x2xf32>, vector<2x32xf32>, vector<128x32xf32> -> vector<128x32xf32>
    %c0_20 = arith.constant 0 : index
    %c0_21 = arith.constant 0 : index
    %41 = vector.load %arg6[%c0_20, %c0_21] : memref<16x32xf32, #tpu.memory_space<vmem>>, vector<16x32xf32>
    %cst_22 = arith.constant dense<0.000000e+00> : vector<128x32xf32>
    %42 = tpu.matmul %13, %41, %cst_22 {dimension_numbers = #tpu.dot_dimension_numbers<[1], [0], [0], [1], [0, 0, 1, 1], [], []>} : vector<128x16xf32>, vector<16x32xf32>, vector<128x32xf32> -> vector<128x32xf32>
    %43 = arith.addf %42, %40 : vector<128x32xf32>
    %44 = math.tanh %43 : vector<128x32xf32>
    %c0_23 = arith.constant 0 : index
    %c0_24 = arith.constant 0 : index
    %45 = vector.load %arg8[%c0_23, %c0_24] : memref<1x32xf32, #tpu.memory_space<vmem>>, vector<1x32xf32>
    %cst_25 = arith.constant dense<0.000000e+00> : vector<1x128xf32>
    %46 = tpu.matmul %45, %44, %cst_25 {dimension_numbers = #tpu.dot_dimension_numbers<[1], [1], [0], [0], [0, 0, 1, 0], [], []>} : vector<1x32xf32>, vector<128x32xf32>, vector<1x128xf32> -> vector<1x128xf32>
    %cst_26 = arith.constant -1.000000e+30 : f32
    %47 = vector.shape_cast %46 : vector<1x128xf32> to vector<1x128xf32>
    %48 = vector.broadcast %47 : vector<1x128xf32> to vector<2x128xf32>
    %49 = vector.broadcast %cst_26 : f32 to vector<2x128xf32>
    %50 = arith.select %24, %48, %49 : vector<2x128xi1>, vector<2x128xf32>
    %cst_27 = arith.constant dense<0xFF800000> : vector<2xf32>
    %51 = vector.multi_reduction <maximumf>, %50, %cst_27 [1] : vector<2x128xf32> to vector<2xf32>
    %52 = vector.shape_cast %51 : vector<2xf32> to vector<2x1xf32>
    %53 = vector.broadcast %52 : vector<2x1xf32> to vector<2x128xf32>
    %54 = arith.subf %50, %53 : vector<2x128xf32>
    %55 = math.exp %54 : vector<2x128xf32>
    %cst_28 = arith.constant dense<0.000000e+00> : vector<2xf32>
    %56 = vector.multi_reduction <add>, %55, %cst_28 [1] : vector<2x128xf32> to vector<2xf32>
    %57 = vector.shape_cast %56 : vector<2xf32> to vector<2x1xf32>
    %58 = vector.broadcast %57 : vector<2x1xf32> to vector<2x128xf32>
    %59 = arith.divf %55, %58 : vector<2x128xf32>
    %cst_29 = arith.constant dense<0.000000e+00> : vector<2x16xf32>
    %60 = tpu.matmul %59, %13, %cst_29 {dimension_numbers = #tpu.dot_dimension_numbers<[1], [0], [0], [1], [0, 0, 1, 1], [], []>} : vector<2x128xf32>, vector<128x16xf32>, vector<2x16xf32> -> vector<2x16xf32>
    %c0_30 = arith.constant 0 : index
    %c0_31 = arith.constant 0 : index
    %61 = vector.load %arg9[%c0_30, %c0_31] : memref<16x128xf32, #tpu.memory_space<vmem>>, vector<16x128xf32>
    %cst_32 = arith.constant dense<0.000000e+00> : vector<2x128xf32>
    %62 = tpu.matmul %60, %61, %cst_32 {dimension_numbers = #tpu.dot_dimension_numbers<[1], [0], [0], [1], [0, 0, 1, 1], [], []>} : vector<2x16xf32>, vector<16x128xf32>, vector<2x128xf32> -> vector<2x128xf32>
    %c0_33 = arith.constant 0 : index
    %c0_34 = arith.constant 0 : index
    %63 = vector.load %arg10[%c0_33, %c0_34] : memref<32x128xf32, #tpu.memory_space<vmem>>, vector<32x128xf32>
    %cst_35 = arith.constant dense<0.000000e+00> : vector<2x128xf32>
    %64 = tpu.matmul %3, %63, %cst_35 {dimension_numbers = #tpu.dot_dimension_numbers<[1], [0], [0], [1], [0, 0, 1, 1], [], []>} : vector<2x32xf32>, vector<32x128xf32>, vector<2x128xf32> -> vector<2x128xf32>
    %65 = arith.addf %62, %64 : vector<2x128xf32>
    %c0_36 = arith.constant 0 : index
    %c0_37 = arith.constant 0 : index
    %66 = vector.load %arg11[%c0_36, %c0_37] : memref<1x128xf32, #tpu.memory_space<vmem>>, vector<1x128xf32>
    %67 = vector.broadcast %66 : vector<1x128xf32> to vector<2x128xf32>
    %68 = arith.addf %65, %67 : vector<2x128xf32>
    %69 = vector.extract_strided_slice %68 {offsets = [0, 0], sizes = [2, 32], strides = [1, 1]} : vector<2x128xf32> to vector<2x32xf32>
    %70 = arith.negf %69 : vector<2x32xf32>
    %71 = math.exp %70 : vector<2x32xf32>
    %cst_38 = arith.constant 1.000000e+00 : f32
    %72 = vector.broadcast %cst_38 : f32 to vector<2x32xf32>
    %73 = arith.addf %72, %71 : vector<2x32xf32>
    %74 = arith.divf %72, %73 : vector<2x32xf32>
    %75 = vector.extract_strided_slice %68 {offsets = [0, 32], sizes = [2, 32], strides = [1, 1]} : vector<2x128xf32> to vector<2x32xf32>
    %76 = arith.negf %75 : vector<2x32xf32>
    %77 = math.exp %76 : vector<2x32xf32>
    %cst_39 = arith.constant 1.000000e+00 : f32
    %78 = vector.broadcast %cst_39 : f32 to vector<2x32xf32>
    %79 = arith.addf %78, %77 : vector<2x32xf32>
    %80 = arith.divf %78, %79 : vector<2x32xf32>
    %81 = vector.extract_strided_slice %68 {offsets = [0, 64], sizes = [2, 32], strides = [1, 1]} : vector<2x128xf32> to vector<2x32xf32>
    %82 = math.tanh %81 : vector<2x32xf32>
    %83 = vector.extract_strided_slice %68 {offsets = [0, 96], sizes = [2, 32], strides = [1, 1]} : vector<2x128xf32> to vector<2x32xf32>
    %84 = arith.negf %83 : vector<2x32xf32>
    %85 = math.exp %84 : vector<2x32xf32>
    %cst_40 = arith.constant 1.000000e+00 : f32
    %86 = vector.broadcast %cst_40 : f32 to vector<2x32xf32>
    %87 = arith.addf %86, %85 : vector<2x32xf32>
    %88 = arith.divf %86, %87 : vector<2x32xf32>
    %89 = arith.mulf %80, %4 : vector<2x32xf32>
    %90 = arith.mulf %74, %82 : vector<2x32xf32>
    %91 = arith.addf %89, %90 : vector<2x32xf32>
    %92 = math.tanh %91 : vector<2x32xf32>
    %93 = arith.mulf %88, %92 : vector<2x32xf32>
    %c0_41 = arith.constant 0 : index
    %c0_42 = arith.constant 0 : index
    %94 = vector.load %arg19[%c0_41, %c0_42] : memref<2x32xf32, #tpu.memory_space<vmem>>, vector<2x32xf32>
    tpu.vector_store %arg19[%c0_41, %c0_42], %93 {strides = array<i32>} : memref<2x32xf32, #tpu.memory_space<vmem>>, vector<2x32xf32>,
    %c0_43 = arith.constant 0 : index
    %c0_44 = arith.constant 0 : index
    %95 = vector.load %arg20[%c0_43, %c0_44] : memref<2x32xf32, #tpu.memory_space<vmem>>, vector<2x32xf32>
    tpu.vector_store %arg20[%c0_43, %c0_44], %91 {strides = array<i32>} : memref<2x32xf32, #tpu.memory_space<vmem>>, vector<2x32xf32>,
    %c0_45 = arith.constant 0 : index
    %c0_46 = arith.constant 0 : index
    %96 = vector.load %arg12[%c0_45, %c0_46] : memref<16x32xf32, #tpu.memory_space<vmem>>, vector<16x32xf32>
    %cst_47 = arith.constant dense<0.000000e+00> : vector<2x32xf32>
    %97 = tpu.matmul %60, %96, %cst_47 {dimension_numbers = #tpu.dot_dimension_numbers<[1], [0], [0], [1], [0, 0, 1, 1], [], []>} : vector<2x16xf32>, vector<16x32xf32>, vector<2x32xf32> -> vector<2x32xf32>
    %c0_48 = arith.constant 0 : index
    %c0_49 = arith.constant 0 : index
    %98 = vector.load %arg13[%c0_48, %c0_49] : memref<32x32xf32, #tpu.memory_space<vmem>>, vector<32x32xf32>
    %cst_50 = arith.constant dense<0.000000e+00> : vector<2x32xf32>
    %99 = tpu.matmul %93, %98, %cst_50 {dimension_numbers = #tpu.dot_dimension_numbers<[1], [0], [0], [1], [0, 0, 1, 1], [], []>} : vector<2x32xf32>, vector<32x32xf32>, vector<2x32xf32> -> vector<2x32xf32>
    %100 = arith.addf %97, %99 : vector<2x32xf32>
    %c0_51 = arith.constant 0 : index
    %c0_52 = arith.constant 0 : index
    %101 = vector.load %arg14[%c0_51, %c0_52] : memref<1x32xf32, #tpu.memory_space<vmem>>, vector<1x32xf32>
    %102 = vector.broadcast %101 : vector<1x32xf32> to vector<2x32xf32>
    %103 = arith.addf %100, %102 : vector<2x32xf32>
    %cst_53 = arith.constant 0.000000e+00 : f32
    %104 = vector.broadcast %cst_53 : f32 to vector<2x32xf32>
    %105 = arith.maximumf %103, %104 : vector<2x32xf32>
    %c0_54 = arith.constant 0 : index
    %c0_55 = arith.constant 0 : index
    %106 = vector.load %arg15[%c0_54, %c0_55] : memref<32x64xf32, #tpu.memory_space<vmem>>, vector<32x64xf32>
    %cst_56 = arith.constant dense<0.000000e+00> : vector<2x64xf32>
    %107 = tpu.matmul %105, %106, %cst_56 {dimension_numbers = #tpu.dot_dimension_numbers<[1], [0], [0], [1], [0, 0, 1, 1], [], []>} : vector<2x32xf32>, vector<32x64xf32>, vector<2x64xf32> -> vector<2x64xf32>
    %c0_57 = arith.constant 0 : index
    %c0_58 = arith.constant 0 : index
    %108 = vector.load %arg16[%c0_57, %c0_58] : memref<1x64xf32, #tpu.memory_space<vmem>>, vector<1x64xf32>
    %109 = vector.broadcast %108 : vector<1x64xf32> to vector<2x64xf32>
    %110 = arith.addf %107, %109 : vector<2x64xf32>
    %111 = tpu.concatenate %93, %91, %110 in 1 : vector<2x32xf32>, vector<2x32xf32>, vector<2x64xf32> -> vector<2x128xf32>
    %c0_59 = arith.constant 0 : index
    %c0_60 = arith.constant 0 : index
    %c0_61 = arith.constant 0 : index
    %112 = vector.load %arg17[%c0_59, %c0_60, %c0_61] : memref<1x2x128xf32, #tpu.memory_space<vmem>>, vector<1x2x128xf32>
    %113 = vector.shape_cast %112 : vector<1x2x128xf32> to vector<2x128xf32>
    %114 = vector.shape_cast %111 : vector<2x128xf32> to vector<1x2x128xf32>
    tpu.vector_store %arg17[%c0_59, %c0_60, %c0_61], %114 {strides = array<i32>} : memref<1x2x128xf32, #tpu.memory_space<vmem>>, vector<1x2x128xf32>,
    %cst_62 = arith.constant dense<0.000000e+00> : vector<128xf32>
    %115 = vector.multi_reduction <add>, %59, %cst_62 [0] : vector<2x128xf32> to vector<128xf32>
    %116 = vector.shape_cast %115 : vector<128xf32> to vector<1x128xf32>
    %c0_63 = arith.constant 0 : index
    %c0_64 = arith.constant 0 : index
    %c0_65 = arith.constant 0 : index
    %117 = vector.load %arg18[%c0_63, %c0_64, %c0_65] : memref<1x1x128xf32, #tpu.memory_space<vmem>>, vector<1x1x128xf32>
    %118 = vector.shape_cast %117 : vector<1x1x128xf32> to vector<1x128xf32>
    %119 = vector.shape_cast %116 : vector<1x128xf32> to vector<1x1x128xf32>
    tpu.vector_store %arg18[%c0_63, %c0_64, %c0_65], %119 {strides = array<i32>} : memref<1x1x128xf32, #tpu.memory_space<vmem>>, vector<1x1x128xf32>,
    return
  }
  func.func @transform_0(%arg0: i32) -> (i32, i32, i32) {
    %c0_i32 = arith.constant 0 : i32
    %c0_i32_0 = arith.constant 0 : i32
    %c0_i32_1 = arith.constant 0 : i32
    return %arg0, %c0_i32, %c0_i32_0 : i32, i32, i32
  }
  func.func @transform_1(%arg0: i32) -> (i32, i32) {
    %c0_i32 = arith.constant 0 : i32
    %c0_i32_0 = arith.constant 0 : i32
    %c0_i32_1 = arith.constant 0 : i32
    return %c0_i32, %c0_i32_0 : i32, i32
  }
  func.func @transform_2(%arg0: i32) -> (i32, i32) {
    %c0_i32 = arith.constant 0 : i32
    %c0_i32_0 = arith.constant 0 : i32
    %c0_i32_1 = arith.constant 0 : i32
    return %c0_i32, %c0_i32_0 : i32, i32
  }
  func.func @transform_3(%arg0: i32) -> (i32, i32) {
    %c0_i32 = arith.constant 0 : i32
    %c0_i32_0 = arith.constant 0 : i32
    %c0_i32_1 = arith.constant 0 : i32
    return %c0_i32, %c0_i32_0 : i32, i32
  }
  func.func @transform_4(%arg0: i32) -> (i32, i32) {
    %c0_i32 = arith.constant 0 : i32
    %c0_i32_0 = arith.constant 0 : i32
    %c0_i32_1 = arith.constant 0 : i32
    return %c0_i32, %c0_i32_0 : i32, i32
  }
  func.func @transform_5(%arg0: i32) -> (i32, i32) {
    %c0_i32 = arith.constant 0 : i32
    %c0_i32_0 = arith.constant 0 : i32
    %c0_i32_1 = arith.constant 0 : i32
    return %c0_i32, %c0_i32_0 : i32, i32
  }
  func.func @transform_6(%arg0: i32) -> (i32, i32) {
    %c0_i32 = arith.constant 0 : i32
    %c0_i32_0 = arith.constant 0 : i32
    %c0_i32_1 = arith.constant 0 : i32
    return %c0_i32, %c0_i32_0 : i32, i32
  }
  func.func @transform_7(%arg0: i32) -> (i32, i32) {
    %c0_i32 = arith.constant 0 : i32
    %c0_i32_0 = arith.constant 0 : i32
    %c0_i32_1 = arith.constant 0 : i32
    return %c0_i32, %c0_i32_0 : i32, i32
  }
  func.func @transform_8(%arg0: i32) -> (i32, i32) {
    %c0_i32 = arith.constant 0 : i32
    %c0_i32_0 = arith.constant 0 : i32
    %c0_i32_1 = arith.constant 0 : i32
    return %c0_i32, %c0_i32_0 : i32, i32
  }
  func.func @transform_9(%arg0: i32) -> (i32, i32) {
    %c0_i32 = arith.constant 0 : i32
    %c0_i32_0 = arith.constant 0 : i32
    %c0_i32_1 = arith.constant 0 : i32
    return %c0_i32, %c0_i32_0 : i32, i32
  }
  func.func @transform_10(%arg0: i32) -> (i32, i32) {
    %c0_i32 = arith.constant 0 : i32
    %c0_i32_0 = arith.constant 0 : i32
    %c0_i32_1 = arith.constant 0 : i32
    return %c0_i32, %c0_i32_0 : i32, i32
  }
  func.func @transform_11(%arg0: i32) -> (i32, i32) {
    %c0_i32 = arith.constant 0 : i32
    %c0_i32_0 = arith.constant 0 : i32
    %c0_i32_1 = arith.constant 0 : i32
    return %c0_i32, %c0_i32_0 : i32, i32
  }
  func.func @transform_12(%arg0: i32) -> (i32, i32) {
    %c0_i32 = arith.constant 0 : i32
    %c0_i32_0 = arith.constant 0 : i32
    %c0_i32_1 = arith.constant 0 : i32
    return %c0_i32, %c0_i32_0 : i32, i32
  }
  func.func @transform_13(%arg0: i32) -> (i32, i32) {
    %c0_i32 = arith.constant 0 : i32
    %c0_i32_0 = arith.constant 0 : i32
    %c0_i32_1 = arith.constant 0 : i32
    return %c0_i32, %c0_i32_0 : i32, i32
  }
  func.func @transform_14(%arg0: i32) -> (i32, i32) {
    %c0_i32 = arith.constant 0 : i32
    %c0_i32_0 = arith.constant 0 : i32
    %c0_i32_1 = arith.constant 0 : i32
    return %c0_i32, %c0_i32_0 : i32, i32
  }
  func.func @transform_15(%arg0: i32) -> (i32, i32) {
    %c0_i32 = arith.constant 0 : i32
    %c0_i32_0 = arith.constant 0 : i32
    %c0_i32_1 = arith.constant 0 : i32
    return %c0_i32, %c0_i32_0 : i32, i32
  }
  func.func @transform_16(%arg0: i32) -> (i32, i32, i32) {
    %c0_i32 = arith.constant 0 : i32
    %c0_i32_0 = arith.constant 0 : i32
    %c0_i32_1 = arith.constant 0 : i32
    return %arg0, %c0_i32, %c0_i32_0 : i32, i32, i32
  }
  func.func @transform_17(%arg0: i32) -> (i32, i32, i32) {
    %c0_i32 = arith.constant 0 : i32
    %c0_i32_0 = arith.constant 0 : i32
    %c0_i32_1 = arith.constant 0 : i32
    return %arg0, %c0_i32, %c0_i32_0 : i32, i32, i32
  }
}

</mosaic_0001>

<bundles_post_ra>
// kernel: squeeze.3
= control target key start
LH: loop header
LB: loop body
LE: loop exit
PB: predicated region body
PF: predicated region fallthrough
CT: control target
= control target key end

     0   :  { %s154_s8 = smov 107   ;;  %s155_s9 = smov 93   ;;  %vm7_vm0 = vcmask 56320   ;;  %s291_s0 = inlined_call_operand.vmem [shape: f32[4,98], index: 0, kind: input, shape index: {}]   ;;  %s292_s1 = inlined_call_operand.vmem [shape: f32[4,2,7,7], index: 1, kind: output, shape index: {}]  }
   0x1   :  { %v4_v0 = vld [vmem:[%s291_s0] sm:$0xf]  ;;  %s153_s0 = smov 121   ;;  %s156_s10 = smov 114  }
   0x2   :  { %5 = vst [vmem:[#allocation0] sm:$0xf] %v4_v0  ;;  %s157_s11 = smov 100   ;;  %s158_s12 = smov 86  }
   0x3   :  { %s159_s13 = smov 79   ;;  %s160_s14 = smov 72  }
   0x4   :  { %s161_s15 = smov 65   ;;  %s162_s16 = smov 58  }
   0x5   :  { %s163_s17 = smov 51   ;;  %s164_s18 = smov 44  }
   0x6   :  { %s165_s19 = smov 37  }
   0x9   :  { %v10_v1 = vld [vmem:[#allocation0] sm:$0xf]  }
   0xa   :  { %v26_v2 = vld [vmem:[#allocation0] sm:$0xf]   ;;  %11 = vrot.lane.b32.xlu0 %v10_v1, %s153_s0 }
   0xb   :  { %27 = vrot.lane.b32.xlu1 %v26_v2, %s154_s8  ;;  %v42_v3 = vld [vmem:[#allocation0] sm:$0xf]  }
   0xc   :  { %43 = vrot.lane.b32.xlu2 %v42_v3, %s155_s9  ;;  %v18_v4 = vld [vmem:[#allocation0] sm:$0xf]  }
   0xd   :  { %v34_v5 = vld [vmem:[#allocation0] sm:$0xf]  }
   0xe   :  { %v50_v6 = vld [vmem:[#allocation0] sm:$0xf]  }
   0xf   :  { %v58_v7 = vld [vmem:[#allocation0] sm:$0xf]  }
  0x10   :  { %v66_v8 = vld [vmem:[#allocation0] sm:$0xf]  }
  0x11   :  { %v74_v9 = vld [vmem:[#allocation0] sm:$0xf]  }
  0x12   :  { %19 = vrot.lane.b32.xlu0 %v18_v4, %s156_s10  ;;  %v82_v10 = vld [vmem:[#allocation0] sm:$0xf]  }
  0x13   :  { %35 = vrot.lane.b32.xlu1 %v34_v5, %s157_s11  ;;  %v90_v11 = vld [vmem:[#allocation0] sm:$0xf]  }
  0x14   :  { %51 = vrot.lane.b32.xlu2 %v50_v6, %s158_s12  ;;  %v98_v12 = vld [vmem:[#allocation0] sm:$0xf]  }
  0x15   :  { %v106_v13 = vld [vmem:[#allocation0] sm:$0xf]  }
  0x16   :  { %v6_v20 = vld [vmem:[#allocation0] sm:$0xf]  }
  0x17   :  { %8 = vst.msk [vmem:[%s292_s1] ss:$16 sm:$0x3] %vm7_vm0, %v6_v20  }
  0x18   :  { %9 = vst.msk [vmem:[%s292_s1] ss:$16 sm:$0xc] %vm7_vm0, %v6_v20  }
  0x1a   :  { %59 = vrot.lane.b32.xlu0 %v58_v7, %s159_s13 }
  0x1b   :  { %67 = vrot.lane.b32.xlu1 %v66_v8, %s160_s14 }
  0x1c   :  { %75 = vrot.lane.b32.xlu2 %v74_v9, %s161_s15 }
  0x22   :  { %83 = vrot.lane.b32.xlu0 %v82_v10, %s162_s16 }
  0x23   :  { %91 = vrot.lane.b32.xlu1 %v90_v11, %s163_s17 }
  0x24   :  { %99 = vrot.lane.b32.xlu2 %v98_v12, %s164_s18 }
  0x2a   :  { %107 = vrot.lane.b32.xlu0 %v106_v13, %s165_s19 }
  0x66   :  { %v44_v14 = vpop.permute.xlu2 %43  }
  0x67   :  { %122 = vst.msk [vmem:[%s292_s1 + $0x5] ss:$16 sm:$0x3] %vm7_vm0, %v44_v14  }
  0x68   :  { %123 = vst.msk [vmem:[%s292_s1 + $0x5] ss:$16 sm:$0xc] %vm7_vm0, %v44_v14  }
  0x6e   :  { %v52_v15 = vpop.permute.xlu2 %51  }
  0x6f   :  { %124 = vst.msk [vmem:[%s292_s1 + $0x6] ss:$16 sm:$0x3] %vm7_vm0, %v52_v15  }
  0x70   :  { %125 = vst.msk [vmem:[%s292_s1 + $0x6] ss:$16 sm:$0xc] %vm7_vm0, %v52_v15  }
  0x76   :  { %v76_v16 = vpop.permute.xlu2 %75  }
  0x77   :  { %130 = vst.msk [vmem:[%s292_s1 + $0xa] ss:$16 sm:$0x3] %vm7_vm0, %v76_v16  }
  0x78   :  { %131 = vst.msk [vmem:[%s292_s1 + $0xa] ss:$16 sm:$0xc] %vm7_vm0, %v76_v16  }
  0x7c   :  { %v12_v17 = vpop.permute.xlu0 %11  }
  0x7d   :  { %v28_v18 = vpop.permute.xlu1 %27   ;;  %114 = vst.msk [vmem:[%s292_s1 + $0x1] ss:$16 sm:$0x3] %vm7_vm0, %v12_v17  }
  0x7e   :  { %115 = vst.msk [vmem:[%s292_s1 + $0x1] ss:$16 sm:$0xc] %vm7_vm0, %v12_v17   ;;  %v100_v19 = vpop.permute.xlu2 %99  }
  0x7f   :  { %118 = vst.msk [vmem:[%s292_s1 + $0x3] ss:$16 sm:$0x3] %vm7_vm0, %v28_v18  }
  0x80   :  { %119 = vst.msk [vmem:[%s292_s1 + $0x3] ss:$16 sm:$0xc] %vm7_vm0, %v28_v18  }
  0x81   :  { %136 = vst.msk [vmem:[%s292_s1 + $0xd] ss:$16 sm:$0x3] %vm7_vm0, %v100_v19  }
  0x82   :  { %137 = vst.msk [vmem:[%s292_s1 + $0xd] ss:$16 sm:$0xc] %vm7_vm0, %v100_v19  }
  0x84   :  { %v20_v21 = vpop.permute.xlu0 %19  }
  0x85   :  { %v36_v22 = vpop.permute.xlu1 %35   ;;  %116 = vst.msk [vmem:[%s292_s1 + $0x2] ss:$16 sm:$0x3] %vm7_vm0, %v20_v21  }
  0x86   :  { %117 = vst.msk [vmem:[%s292_s1 + $0x2] ss:$16 sm:$0xc] %vm7_vm0, %v20_v21  }
  0x87   :  { %120 = vst.msk [vmem:[%s292_s1 + $0x4] ss:$16 sm:$0x3] %vm7_vm0, %v36_v22  }
  0x88   :  { %121 = vst.msk [vmem:[%s292_s1 + $0x4] ss:$16 sm:$0xc] %vm7_vm0, %v36_v22  }
  0x8c   :  { %v60_v23 = vpop.permute.xlu0 %59  }
  0x8d   :  { %v68_v24 = vpop.permute.xlu1 %67   ;;  %126 = vst.msk [vmem:[%s292_s1 + $0x8] ss:$16 sm:$0x3] %vm7_vm0, %v60_v23  }
  0x8e   :  { %127 = vst.msk [vmem:[%s292_s1 + $0x8] ss:$16 sm:$0xc] %vm7_vm0, %v60_v23  }
  0x8f   :  { %128 = vst.msk [vmem:[%s292_s1 + $0x9] ss:$16 sm:$0x3] %vm7_vm0, %v68_v24  }
  0x90   :  { %129 = vst.msk [vmem:[%s292_s1 + $0x9] ss:$16 sm:$0xc] %vm7_vm0, %v68_v24  }
  0x94   :  { %v84_v25 = vpop.permute.xlu0 %83  }
  0x95   :  { %v92_v26 = vpop.permute.xlu1 %91   ;;  %132 = vst.msk [vmem:[%s292_s1 + $0xb] ss:$16 sm:$0x3] %vm7_vm0, %v84_v25  }
  0x96   :  { %133 = vst.msk [vmem:[%s292_s1 + $0xb] ss:$16 sm:$0xc] %vm7_vm0, %v84_v25  }
  0x97   :  { %134 = vst.msk [vmem:[%s292_s1 + $0xc] ss:$16 sm:$0x3] %vm7_vm0, %v92_v26  }
  0x98   :  { %135 = vst.msk [vmem:[%s292_s1 + $0xc] ss:$16 sm:$0xc] %vm7_vm0, %v92_v26  }
  0x9c   :  { %v108_v27 = vpop.permute.xlu0 %107  }
  0x9d   :  { %138 = vst.msk [vmem:[%s292_s1 + $0xe] ss:$16 sm:$0x3] %vm7_vm0, %v108_v27  }
  0x9e   :  { %139 = vst.msk [vmem:[%s292_s1 + $0xe] ss:$16 sm:$0xc] %vm7_vm0, %v108_v27  }

// kernel: experimental_forward_sequence.1
= control target key start
LH: loop header
LB: loop body
LE: loop exit
PB: predicated region body
PF: predicated region fallthrough
CT: control target
= control target key end

     0   :  { %s1772_s24 = smov 0   ;;  %s2232_s0 = inlined_call_operand.vmem [shape: f32[4,128,32], index: 0, kind: input, shape index: {}]   ;;  %s2233_s1 = inlined_call_operand.vmem [shape: f32[32,16], index: 1, kind: input, shape index: {}]   ;;  %s2234_s2 = inlined_call_operand.vmem [shape: f32[1,16], index: 2, kind: input, shape index: {}]   ;;  %s2235_s3 = inlined_call_operand.vmem [shape: f32[2,32], index: 3, kind: input, shape index: {}]   ;;  %s2236_s4 = inlined_call_operand.vmem [shape: f32[2,32], index: 4, kind: input, shape index: {}]   ;;  %s2237_s5 = inlined_call_operand.vmem [shape: f32[16,32], index: 5, kind: input, shape index: {}]   ;;  %s2238_s6 = inlined_call_operand.vmem [shape: f32[32,32], index: 6, kind: input, shape index: {}]   ;;  %s2239_s7 = inlined_call_operand.vmem [shape: f32[1,32], index: 7, kind: input, shape index: {}]   ;;  %s2240_s8 = inlined_call_operand.vmem [shape: f32[16,128], index: 8, kind: input, shape index: {}]   ;;  %s2241_s9 = inlined_call_operand.vmem [shape: f32[32,128], index: 9, kind: input, shape index: {}]   ;;  %s2242_s10 = inlined_call_operand.vmem [shape: f32[1,128], index: 10, kind: input, shape index: {}]   ;;  %s2243_s11 = inlined_call_operand.vmem [shape: f32[16,32], index: 11, kind: input, shape index: {}]   ;;  %s2244_s12 = inlined_call_operand.vmem [shape: f32[32,32], index: 12, kind: input, shape index: {}]   ;;  %s2245_s13 = inlined_call_operand.vmem [shape: f32[1,32], index: 13, kind: input, shape index: {}]   ;;  %s2246_s14 = inlined_call_operand.vmem [shape: f32[32,64], index: 14, kind: input, shape index: {}]   ;;  %s2247_s15 = inlined_call_operand.vmem [shape: f32[1,64], index: 15, kind: input, shape index: {}]   ;;  %s2248_s16 = inlined_call_operand.vmem [shape: f32[4,2,128], index: 16, kind: output, shape index: {0}]   ;;  %s2249_s17 = inlined_call_operand.vmem [shape: f32[4,1,128], index: 17, kind: output, shape index: {1}]  }
   0x1   :  { %2254 = sst [smem:[#allocation5_spill]] %s2232_s0 }
   0x2   :  { %2255 = sst [smem:[#allocation6_spill]] %s2233_s1 }
   0x3   :  { %2256 = sst [smem:[#allocation7_spill]] %s2245_s13 }
   0x4   :  { %2257 = sst [smem:[#allocation8_spill]] %s2247_s15 }
   0x5 LB: > { %2258 = sst [smem:[#allocation4_spill]] %s1676_s24  ;;  %s1509_s25 = sadd.s32 4294967295, %s1676_s24   ;;  %s1676_s24 = sphi %s1772_s24, %s28_s24  }
   0x6   : > { %p1513_p0 = scmp.ge.s32.totalorder %s1676_s24, 1  ;;  %p490_p1 = scmp.lt.s32.totalorder %s1676_s24, 5 }
   0x8   : > { %p491_p2 = pnand %p1513_p0, %p490_p1 }
   0x9   : > { %p544_p3 = scmp.lt.s32.totalorder (!%p491_p2), %s1509_s25, 3  ;;  %s2259_s30 = sld [smem:[#allocation5_spill]] (!%p491_p2) }
   0xa   : > { %494 = sbr.rel (%p491_p2) target bundleno = 1956 (0x7a4), region = 84  ;;  %p1517_p4 = scmp.ne.s32.totalorder (!%p491_p2), %s1509_s25, 0 }
   0xf   : > { %s1780_s26 = scalar_select %p544_p3, %s1509_s25, 3 }
  0x10   : > { %559 = sbr.rel (%p1517_p4) target bundleno = 24 (0x18), region = 88 }
  0x11   : > { %s1609_s27 = sshll.u32 %s1780_s26, 7  ;;  %s1516_s28 = sshll.u32 %s1780_s26, 1 }
  0x12   : > { %s1787_s18 = scalar_lea.vmem %s2259_s30, %s1609_s27  ;;  %s1792_s20 = scalar_lea.vmem %s2248_s16, %s1516_s28 }
  0x13   : > { %s555_s23 = scalar_lea.vmem %s2249_s17, %s1780_s26 }
  0x15   : > { %v560_v0 = vld [vmem:[%s2235_s3] sm:$0x3]  ;;  %vm561_vm0 = vcmask 254976  }
  0x16   : > { %v563_v1 = vld [vmem:[%s2236_s4] sm:$0x3]  ;;  %562 = vst.msk [vmem:[#allocation2] sm:$0x3] %vm561_vm0, %v560_v0 }
  0x17   : > { %564 = vst.msk [vmem:[#allocation3] sm:$0x3] %vm561_vm0, %v563_v1 }
  0x18 PF: > { %s2260_s0 = sld [smem:[#allocation6_spill]]  ;;  %v832_v4 = vld [vmem:[%s2238_s6 + $0x18] sm:$0xff]  ;;  %v831_v5 = vld [vmem:[%s2238_s6 + $0x10] sm:$0xff]  ;;  %v830_v7 = vld [vmem:[%s2238_s6 + $0x8] sm:$0xff]  ;;  %vm591_vm1 = vcmask 261120   ;;  %v721_v27 = vlaneseq  ;;  %vm905_vm5 = vcmask 1041408  }
  0x19   : > { %848 = vmatpush.msra.mxu1 %v832_v4  ;;  %v567_v9 = vld [vmem:[%s1787_s18] sm:$0xff]  ;;  %v568_v12 = vld [vmem:[%s1787_s18 + $0x8] sm:$0xff]  ;;  %v569_v13 = vld [vmem:[%s1787_s18 + $0x10] sm:$0xff]  ;;  %v1678_v37 = vmov 0.0   ;;  %vm856_vm6 = vcmask 15360   ;;  %vm976_vm9 = vcmask 130048  }
  0x1a   : > { %v829_v10 = vld [vmem:[%s2238_s6] sm:$0xff]  ;;  %v570_v14 = vld [vmem:[%s1787_s18 + $0x18] sm:$0xff]  ;;  %v572_v16 = vld [vmem:[%s1787_s18 + $0x28] sm:$0xff]  ;;  %v1866_v28 = vand.u32 127, %v721_v27  ;;  %v1871_v31 = vshrl.u32 %v721_v27, 7  ;;  %s1679_s26 = smov 64  }
  0x1b   : > { %849 = vmatpush.msra.mxu1 %v831_v5  ;;  %v571_v15 = vld [vmem:[%s1787_s18 + $0x20] sm:$0xff]  ;;  %v573_v17 = vld [vmem:[%s1787_s18 + $0x30] sm:$0xff]  ;;  %v574_v18 = vld [vmem:[%s1787_s18 + $0x38] sm:$0xff]  ;;  %s1681_s13 = smov 96   ;;  %s2263_s22 = sld [smem:[#allocation7_spill]] }
  0x1c   : > { %v575_v19 = vld [vmem:[%s1787_s18 + $0x40] sm:$0xff]  ;;  %v576_v20 = vld [vmem:[%s1787_s18 + $0x48] sm:$0xff]  ;;  %v577_v21 = vld [vmem:[%s1787_s18 + $0x50] sm:$0xff]  ;;  %v763_v30 = vadd.s32 1, %v1866_v28  ;;  %v1874_v32 = vmul.u32 49, %v1866_v28  ;;  %v731_v36 = vadd.s32 8, %v1871_v31 }
  0x1d   : > { %v1829_v11 = vld [vmem:[#allocation2] sm:$0x3]  ;;  %850 = vmatpush.msra.mxu1 %v830_v7  ;;  %v578_v22 = vld [vmem:[%s1787_s18 + $0x58] sm:$0xff]  ;;  %v975_v24 = vld [vmem:[%s2237_s5 + $0x8] sm:$0xff]  ;;  %v732_v43 = vadd.s32 16, %v1871_v31  ;;  %v733_v48 = vadd.s32 24, %v1871_v31 }
  0x1e   : > { %v586_v2 = vld [vmem:[%s2260_s0 + $0x18] sm:$0xff]  ;;  %v585_v3 = vld [vmem:[%s2260_s0 + $0x10] sm:$0xff]  ;;  %v584_v6 = vld [vmem:[%s2260_s0 + $0x8] sm:$0xff]  ;;  %1039 = vmatpush.msra.mxu3 %v975_v24  ;;  %v1876_v33 = vmul.u32 49, %v763_v30  ;;  %vm747_vm2 = vcmp.ge.s32.totalorder %v1871_v31, %v1874_v32  ;;  %vm748_vm7 = vcmp.ge.s32.totalorder %v731_v36, %v1874_v32  ;;  %v734_v53 = vadd.s32 32, %v1871_v31  ;;  %s2264_s28 = sld [smem:[#allocation8_spill]] }
  0x1f   : > { %652 = vmatpush.msra.mxu0 %v586_v2  ;;  %v583_v8 = vld [vmem:[%s2260_s0] sm:$0xff]  ;;  %851 = vmatpush.msra.mxu1 %v829_v10  ;;  %v580_v26 = vld [vmem:[%s1787_s18 + $0x68] sm:$0xff]  ;;  %v581_v29 = vld [vmem:[%s1787_s18 + $0x70] sm:$0xff]  ;;  %vm749_vm11 = vcmp.ge.s32.totalorder %v732_v43, %v1874_v32  ;;  %vm750_vm14 = vcmp.ge.s32.totalorder %v733_v48, %v1874_v32  ;;  %v735_v58 = vadd.s32 40, %v1871_v31  ;;  %v736_v63 = vadd.s32 48, %v1871_v31 }
  0x20   : > { %1550 = vmatmul.msk.f32.vlgmr.msra.gmra.mxu1 %vm591_vm1, %v1829_v11  ;;  %v579_v23 = vld [vmem:[%s1787_s18 + $0x60] sm:$0xff]  ;;  %v582_v34 = vld [vmem:[%s1787_s18 + $0x78] sm:$0xff]  ;;  %vm765_vm3 = vcmp.lt.s32.totalorder %v1871_v31, %v1876_v33  ;;  %vm766_vm8 = vcmp.lt.s32.totalorder %v731_v36, %v1876_v33  ;;  %vm767_vm12 = vcmp.lt.s32.totalorder %v732_v43, %v1876_v33  ;;  %vm768_vm15 = vcmp.lt.s32.totalorder %v733_v48, %v1876_v33 }
  0x21   : > { %653 = vmatpush.msra.mxu0 %v585_v3  ;;  %v974_v25 = vld [vmem:[%s2237_s5] sm:$0xff]  ;;  %vm781_vm4 = vmand %vm747_vm2, %vm765_vm3  ;;  %vm751_vm2 = vcmp.ge.s32.totalorder %v734_v53, %v1874_v32  ;;  %vm769_vm3 = vcmp.lt.s32.totalorder %v734_v53, %v1876_v33  ;;  %v737_v4 = vadd.s32 56, %v1871_v31  ;;  %v743_v43 = vadd.s32 104, %v1871_v31 }
  0x22   : > { %1040 = vmatpush.msra.mxu3 %v974_v25  ;;  %v1887_v35 = vld [vmem:[%s2234_s2] ss:$0 sm:$0xff]  ;;  %v1534_v38 = vsel %vm781_vm4, 1.0, %v1678_v37  ;;  %vm782_vm10 = vmand %vm748_vm7, %vm766_vm8  ;;  %vm752_vm7 = vcmp.ge.s32.totalorder %v735_v58, %v1874_v32  ;;  %vm770_vm8 = vcmp.lt.s32.totalorder %v735_v58, %v1876_v33  ;;  %v741_v25 = vadd.s32 88, %v1871_v31 }
  0x23   : > { %654 = vmatpush.msra.mxu0 %v584_v6  ;;  %v1535_v44 = vsel %vm782_vm10, 1.0, %v1678_v37  ;;  %vm783_vm13 = vmand %vm749_vm11, %vm767_vm12  ;;  %vm753_vm11 = vcmp.ge.s32.totalorder %v736_v63, %v1874_v32  ;;  %vm771_vm12 = vcmp.lt.s32.totalorder %v736_v63, %v1876_v33 }
  0x24   : > { %v1536_v49 = vsel %vm783_vm13, 1.0, %v1678_v37  ;;  %vm784_vm0 = vmand %vm750_vm14, %vm768_vm15  ;;  %vm754_vm14 = vcmp.ge.s32.totalorder %v737_v4, %v1874_v32  ;;  %vm772_vm15 = vcmp.lt.s32.totalorder %v737_v4, %v1876_v33 }
  0x25   : > { %655 = vmatpush.msra.mxu0 %v583_v8  ;;  %v1537_v54 = vsel %vm784_vm0, 1.0, %v1678_v37  ;;  %vm785_vm4 = vmand %vm751_vm2, %vm769_vm3 }
  0x26   : > { %1518 = vmatmul.msk.f32.vlgmr.msra.gmra.mxu0 %vm591_vm1, %v567_v9  ;;  %v1538_v59 = vsel %vm785_vm4, 1.0, %v1678_v37  ;;  %vm786_vm10 = vmand %vm752_vm7, %vm770_vm8  ;;  %v738_v9 = vadd.s32 64, %v1871_v31 }
  0x27   : > { %v1539_v0 = vsel %vm786_vm10, 1.0, %v1678_v37  ;;  %vm787_vm13 = vmand %vm753_vm11, %vm771_vm12 }
  0x28   : > { %v1540_v5 = vsel %vm787_vm13, 1.0, %v1678_v37  ;;  %vm788_vm0 = vmand %vm754_vm14, %vm772_vm15  ;;  %vm755_vm2 = vcmp.ge.s32.totalorder %v738_v9, %v1874_v32  ;;  %vm773_vm3 = vcmp.lt.s32.totalorder %v738_v9, %v1876_v33  ;;  %vm758_vm14 = vcmp.ge.s32.totalorder %v741_v25, %v1874_v32 }
  0x29   : > { %v1541_v10 = vsel %vm788_vm0, 1.0, %v1678_v37  ;;  %vm789_vm4 = vmand %vm755_vm2, %vm773_vm3  ;;  %vm776_vm15 = vcmp.lt.s32.totalorder %v741_v25, %v1876_v33 }
  0x2a   : > { %vm792_vm0 = vmand %vm758_vm14, %vm776_vm15 }
  0x2b   : > { %v1545_v36 = vsel %vm792_vm0, 1.0, %v1678_v37 }
  0x2e   : > { %1519 = vmatmul.msk.f32.gmra.mxu0 %vm591_vm1, %v568_v12 }
  0x36   : > { %1520 = vmatmul.msk.f32.gmra.mxu0 %vm591_vm1, %v569_v13 }
  0x3e   : > { %1521 = vmatmul.msk.f32.gmra.mxu0 %vm591_vm1, %v570_v14 }
  0x46   : > { %1522 = vmatmul.msk.f32.gmra.mxu0 %vm591_vm1, %v571_v15  ;;  %v739_v15 = vadd.s32 72, %v1871_v31 }
  0x48   : > { %vm756_vm7 = vcmp.ge.s32.totalorder %v739_v15, %v1874_v32  ;;  %vm774_vm8 = vcmp.lt.s32.totalorder %v739_v15, %v1876_v33 }
  0x49   : > { %vm790_vm10 = vmand %vm756_vm7, %vm774_vm8  ;;  %vm760_vm7 = vcmp.ge.s32.totalorder %v743_v43, %v1874_v32  ;;  %vm778_vm8 = vcmp.lt.s32.totalorder %v743_v43, %v1876_v33 }
  0x4e   : > { %1523 = vmatmul.msk.f32.gmra.mxu0 %vm591_vm1, %v572_v16  ;;  %v1542_v16 = vsel %vm789_vm4, 1.0, %v1678_v37 }
  0x56   : > { %1524 = vmatmul.msk.f32.gmra.mxu0 %vm591_vm1, %v573_v17 }
  0x5e   : > { %1525 = vmatmul.msk.f32.gmra.mxu0 %vm591_vm1, %v574_v18 }
  0x66   : > { %1526 = vmatmul.msk.f32.gmra.mxu0 %vm591_vm1, %v575_v19 }
  0x6e   : > { %1527 = vmatmul.msk.f32.gmra.mxu0 %vm591_vm1, %v576_v20  ;;  %v740_v20 = vadd.s32 80, %v1871_v31 }
  0x70   : > { %vm757_vm11 = vcmp.ge.s32.totalorder %v740_v20, %v1874_v32  ;;  %vm775_vm12 = vcmp.lt.s32.totalorder %v740_v20, %v1876_v33 }
  0x71   : > { %vm791_vm13 = vmand %vm757_vm11, %vm775_vm12 }
  0x76   : > { %1528 = vmatmul.msk.f32.gmra.mxu0 %vm591_vm1, %v577_v21  ;;  %v1543_v21 = vsel %vm790_vm10, 1.0, %v1678_v37  ;;  %vm794_vm10 = vmand %vm760_vm7, %vm778_vm8 }
  0x77   : > { %v1547_v53 = vsel %vm794_vm10, 1.0, %v1678_v37 }
  0x7e   : > { %1529 = vmatmul.msk.f32.gmra.mxu0 %vm591_vm1, %v578_v22 }
  0x86   : > { %1530 = vmatmul.msk.f32.gmra.mxu0 %vm591_vm1, %v579_v23 }
  0x8e   : > { %1531 = vmatmul.msk.f32.gmra.mxu0 %vm591_vm1, %v580_v26  ;;  %v1544_v26 = vsel %vm791_vm13, 1.0, %v1678_v37 }
  0x96   : > { %1532 = vmatmul.msk.f32.gmra.mxu0 %vm591_vm1, %v581_v29 }
  0x9d   : > { %v853_v40 = vpop.f32.mrf.mxu1 }
  0x9e   : > { %1533 = vmatmul.msk.f32.gmra.mxu0 %vm591_vm1, %v582_v34  ;;  %1551 = vmatpush.msk.msra.mxu2 %vm905_vm5, %v853_v40  ;;  %v742_v34 = vadd.s32 96, %v1871_v31 }
  0x9f   : > { %1552 = vmatmul.msk.f32.vlgmr.msra.gmra.mxu2 %vm856_vm6, %v1534_v38 }
  0xa0   : > { %vm759_vm2 = vcmp.ge.s32.totalorder %v742_v34, %v1874_v32  ;;  %vm777_vm3 = vcmp.lt.s32.totalorder %v742_v34, %v1876_v33 }
  0xa1   : > { %vm793_vm4 = vmand %vm759_vm2, %vm777_vm3 }
  0xa3   : > { %v657_v39 = vpop.f32.mrf.mxu0 }
  0xa4   : > { %v1892_v41 = vadd.f32 %v1887_v35, %v657_v39 }
  0xa6   : > { %v2252_v42 = vmax.f32 %v1892_v41, 0.0 }
  0xa7   : > { %1553 = vmatmul.msk.f32.gmra.mxu2 %vm856_vm6, %v1535_v44  ;;  %v1546_v44 = vsel %vm793_vm4, 1.0, %v1678_v37 }
  0xa8   : > { %1568 = vmatmul.msk.f32.vlgmr.msra.gmra.mxu3 %vm976_vm9, %v2252_v42 }
  0xab   : > { %v660_v45 = vpop.f32.mrf.mxu0 }
  0xac   : > { %v1905_v46 = vadd.f32 %v1887_v35, %v660_v45 }
  0xae   : > { %v2253_v47 = vmax.f32 %v1905_v46, 0.0 }
  0xaf   : > { %1554 = vmatmul.msk.f32.gmra.mxu2 %vm856_vm6, %v1536_v49 }
  0xb0   : > { %1569 = vmatmul.msk.f32.gmra.mxu3 %vm976_vm9, %v2253_v47 }
  0xb3   : > { %v663_v50 = vpop.f32.mrf.mxu0 }
  0xb4   : > { %v1917_v51 = vadd.f32 %v1887_v35, %v663_v50  ;;  %v744_v50 = vadd.s32 112, %v1871_v31 }
  0xb6   : > { %v707_v52 = vmax.f32 %v1917_v51, 0.0  ;;  %vm761_vm11 = vcmp.ge.s32.totalorder %v744_v50, %v1874_v32  ;;  %vm779_vm12 = vcmp.lt.s32.totalorder %v744_v50, %v1876_v33 }
  0xb7   : > { %1555 = vmatmul.msk.f32.gmra.mxu2 %vm856_vm6, %v1537_v54  ;;  %vm795_vm13 = vmand %vm761_vm11, %vm779_vm12 }
  0xb8   : > { %1570 = vmatmul.msk.f32.gmra.mxu3 %vm976_vm9, %v707_v52 }
  0xbb   : > { %v666_v55 = vpop.f32.mrf.mxu0 }
  0xbc   : > { %v1929_v56 = vadd.f32 %v1887_v35, %v666_v55 }
  0xbe   : > { %v708_v57 = vmax.f32 %v1929_v56, 0.0 }
  0xbf   : > { %1556 = vmatmul.msk.f32.gmra.mxu2 %vm856_vm6, %v1538_v59  ;;  %v745_v59 = vadd.s32 120, %v1871_v31 }
  0xc0   : > { %1571 = vmatmul.msk.f32.gmra.mxu3 %vm976_vm9, %v708_v57 }
  0xc1   : > { %vm762_vm14 = vcmp.ge.s32.totalorder %v745_v59, %v1874_v32  ;;  %vm780_vm15 = vcmp.lt.s32.totalorder %v745_v59, %v1876_v33 }
  0xc2   : > { %vm796_vm0 = vmand %vm762_vm14, %vm780_vm15  ;;  %vm1420_vm14 = vcmask 523264  }
  0xc3   : > { %v669_v60 = vpop.f32.mrf.mxu0  ;;  %v1549_v4 = vsel %vm796_vm0, 1.0, %v1678_v37 }
  0xc4   : > { %v1941_v61 = vadd.f32 %v1887_v35, %v669_v60  ;;  %v1548_v60 = vsel %vm795_vm13, 1.0, %v1678_v37  ;;  %vm1323_vm13 = vcmask 254976  }
  0xc6   : > { %v709_v62 = vmax.f32 %v1941_v61, 0.0 }
  0xc7   : > { %1557 = vmatmul.msk.f32.gmra.mxu2 %vm856_vm6, %v1539_v0 }
  0xc8   : > { %1572 = vmatmul.msk.f32.gmra.mxu3 %vm976_vm9, %v709_v62 }
  0xcb   : > { %v672_v1 = vpop.f32.mrf.mxu0 }
  0xcc   : > { %v1953_v2 = vadd.f32 %v1887_v35, %v672_v1 }
  0xce   : > { %v710_v3 = vmax.f32 %v1953_v2, 0.0  ;;  %v725_v2 = vmul.u32 49, %v1871_v31 }
  0xcf   : > { %1558 = vmatmul.msk.f32.gmra.mxu2 %vm856_vm6, %v1540_v5 }
  0xd0   : > { %1573 = vmatmul.msk.f32.gmra.mxu3 %vm976_vm9, %v710_v3 }
  0xd3   : > { %v675_v6 = vpop.f32.mrf.mxu0 }
  0xd4   : > { %v1965_v7 = vadd.f32 %v1887_v35, %v675_v6 }
  0xd6   : > { %v711_v8 = vmax.f32 %v1965_v7, 0.0  ;;  %v727_v7 = vadd.s32 1, %v1871_v31 }
  0xd7   : > { %1559 = vmatmul.msk.f32.gmra.mxu2 %vm856_vm6, %v1541_v10 }
  0xd8   : > { %1574 = vmatmul.msk.f32.gmra.mxu3 %vm976_vm9, %v711_v8 }
  0xdb   : > { %v678_v12 = vpop.f32.mrf.mxu0 }
  0xdc   : > { %v1977_v13 = vadd.f32 %v1887_v35, %v678_v12 }
  0xde   : > { %v712_v14 = vmax.f32 %v1977_v13, 0.0  ;;  %v2262_v13 = vmax.f32 %v1892_v41, 0.0 }
  0xdf   : > { %1560 = vmatmul.msk.f32.gmra.mxu2 %vm856_vm6, %v1542_v16 }
  0xe0   : > { %1575 = vmatmul.msk.f32.gmra.mxu3 %vm976_vm9, %v712_v14 }
  0xe3   : > { %v681_v17 = vpop.f32.mrf.mxu0 }
  0xe4   : > { %v1989_v18 = vadd.f32 %v1887_v35, %v681_v17 }
  0xe6   : > { %v713_v19 = vmax.f32 %v1989_v18, 0.0  ;;  %v2261_v18 = vmax.f32 %v1905_v46, 0.0 }
  0xe7   : > { %1561 = vmatmul.msk.f32.gmra.mxu2 %vm856_vm6, %v1543_v21 }
  0xe8   : > { %1576 = vmatmul.msk.f32.gmra.mxu3 %vm976_vm9, %v713_v19 }
  0xeb   : > { %v684_v22 = vpop.f32.mrf.mxu0 }
  0xec   : > { %v2001_v23 = vadd.f32 %v1887_v35, %v684_v22 }
  0xee   : > { %v714_v24 = vmax.f32 %v2001_v23, 0.0  ;;  %v1331_v23 = vld [vmem:[%s2243_s11 + $0x8] sm:$0xff] }
  0xef   : > { %1562 = vmatmul.msk.f32.gmra.mxu2 %vm856_vm6, %v1544_v26 }
  0xf0   : > { %1577 = vmatmul.msk.f32.gmra.mxu3 %vm976_vm9, %v714_v24  ;;  %1372 = vmatpush.msrb.mxu2 %v1331_v23 }
  0xf3   : > { %v687_v27 = vpop.f32.mrf.mxu0 }
  0xf4   : > { %v2013_v29 = vadd.f32 %v1887_v35, %v687_v27 }
  0xf6   : > { %v715_v30 = vmax.f32 %v2013_v29, 0.0 }
  0xf7   : > { %1563 = vmatmul.msk.f32.gmra.mxu2 %vm856_vm6, %v1545_v36 }
  0xf8   : > { %1578 = vmatmul.msk.f32.gmra.mxu3 %vm976_vm9, %v715_v30 }
  0xfb   : > { %v690_v38 = vpop.f32.mrf.mxu0 }
  0xfc   : > { %v2025_v39 = vadd.f32 %v1887_v35, %v690_v38 }
  0xfe   : > { %v716_v40 = vmax.f32 %v2025_v39, 0.0 }
  0xff   : > { %1564 = vmatmul.msk.f32.gmra.mxu2 %vm856_vm6, %v1546_v44 }
 0x100   : > { %1579 = vmatmul.msk.f32.gmra.mxu3 %vm976_vm9, %v716_v40 }
 0x103   : > { %v693_v45 = vpop.f32.mrf.mxu0 }
 0x104   : > { %v2037_v48 = vadd.f32 %v1887_v35, %v693_v45 }
 0x106   : > { %v717_v49 = vmax.f32 %v2037_v48, 0.0 }
 0x107   : > { %1565 = vmatmul.msk.f32.gmra.mxu2 %vm856_vm6, %v1547_v53 }
 0x108   : > { %1580 = vmatmul.msk.f32.gmra.mxu3 %vm976_vm9, %v717_v49 }
 0x10b   : > { %v696_v54 = vpop.f32.mrf.mxu0 }
 0x10c   : > { %v2049_v55 = vadd.f32 %v1887_v35, %v696_v54 }
 0x10e   : > { %v718_v58 = vmax.f32 %v2049_v55, 0.0 }
 0x10f   : > { %1566 = vmatmul.msk.f32.gmra.mxu2 %vm856_vm6, %v1548_v60 }
 0x110   : > { %1581 = vmatmul.msk.f32.gmra.mxu3 %vm976_vm9, %v718_v58 }
 0x113   : > { %v699_v63 = vpop.f32.mrf.mxu0 }
 0x114   : > { %v2061_v0 = vadd.f32 %v1887_v35, %v699_v63 }
 0x116   : > { %v719_v1 = vmax.f32 %v2061_v0, 0.0 }
 0x117   : > { %1567 = vmatmul.msk.f32.gmra.mxu2 %vm856_vm6, %v1549_v4  ;;  %vm726_vm6 = vcmp.ge.s32.totalorder %v1866_v28, %v725_v2 }
 0x118   : > { %1582 = vmatmul.msk.f32.gmra.mxu3 %vm976_vm9, %v719_v1 }
 0x11b   : > { %v702_v5 = vpop.f32.mrf.mxu0 }
 0x11c   : > { %v2072_v6 = vadd.f32 %v1887_v35, %v702_v5 }
 0x11e   : > { %v720_v32 = vmax.f32 %v2072_v6, 0.0 }
 0x120   : > { %1583 = vmatmul.msk.f32.gmra.mxu3 %vm976_vm9, %v720_v32 }
 0x122   : > { %v926_v33 = vpop.f32.mrf.mxu2 }
 0x12a   : > { %v929_v12 = vpop.f32.mrf.mxu2 }
 0x12b   : > { %v1042_v9 = vpop.f32.mrf.mxu3 }
 0x12c   : > { %v2079_v10 = vadd.f32 %v1042_v9, %v926_v33 }
 0x132   : > { %v932_v37 = vpop.f32.mrf.mxu2 }
 0x133   : > { %v1045_v15 = vpop.f32.mrf.mxu3 }
 0x134   : > { %v2081_v16 = vadd.f32 %v1045_v15, %v929_v12 }
 0x13a   : > { %v935_v20 = vpop.f32.mrf.mxu2 }
 0x13b   : > { %v1048_v17 = vpop.f32.mrf.mxu3 }
 0x13c   : > { %v2083_v35 = vadd.f32 %v1048_v17, %v932_v37 }
 0x142   : > { %v938_v25 = vpop.f32.mrf.mxu2 }
 0x143   : > { %v1051_v21 = vpop.f32.mrf.mxu3 }
 0x144   : > { %v2085_v22 = vadd.f32 %v1051_v21, %v935_v20 }
 0x14a   : > { %v941_v34 = vpop.f32.mrf.mxu2 }
 0x14b   : > { %v1054_v26 = vpop.f32.mrf.mxu3 }
 0x14c   : > { %v2087_v27 = vadd.f32 %v1054_v26, %v938_v25 }
 0x152   : > { %v944_v43 = vpop.f32.mrf.mxu2 }
 0x153   : > { %v1057_v36 = vpop.f32.mrf.mxu3 }
 0x154   : > { %v1058_v38 = vadd.f32 %v1057_v36, %v941_v34 }
 0x15a   : > { %v947_v50 = vpop.f32.mrf.mxu2 }
 0x15b   : > { %v1060_v44 = vpop.f32.mrf.mxu3 }
 0x15c   : > { %v1061_v45 = vadd.f32 %v1060_v44, %v944_v43 }
 0x162   : > { %v950_v59 = vpop.f32.mrf.mxu2 }
 0x163   : > { %v1063_v53 = vpop.f32.mrf.mxu3 }
 0x164   : > { %v1064_v54 = vadd.f32 %v1063_v53, %v947_v50 }
 0x16a   : > { %v953_v4 = vpop.f32.mrf.mxu2 }
 0x16b   : > { %v1066_v60 = vpop.f32.mrf.mxu3 }
 0x16c   : > { %v1067_v63 = vadd.f32 %v1066_v60, %v950_v59 }
 0x172   : > { %v956_v9 = vpop.f32.mrf.mxu2 }
 0x173   : > { %v1069_v5 = vpop.f32.mrf.mxu3 }
 0x174   : > { %v1070_v33 = vadd.f32 %v1069_v5, %v953_v4 }
 0x17a   : > { %v959_v15 = vpop.f32.mrf.mxu2 }
 0x17b   : > { %v1072_v12 = vpop.f32.mrf.mxu3 }
 0x17c   : > { %v1073_v47 = vadd.f32 %v1072_v12, %v956_v9 }
 0x182   : > { %v962_v17 = vpop.f32.mrf.mxu2 }
 0x183   : > { %v1075_v37 = vpop.f32.mrf.mxu3 }
 0x184   : > { %v1076_v5 = vadd.f32 %v1075_v37, %v959_v15 }
 0x18a   : > { %v965_v21 = vpop.f32.mrf.mxu2 }
 0x18b   : > { %v1078_v20 = vpop.f32.mrf.mxu3 }
 0x18c   : > { %v1079_v60 = vadd.f32 %v1078_v20, %v962_v17 }
 0x192   : > { %v968_v26 = vpop.f32.mrf.mxu2 }
 0x193   : > { %v1081_v25 = vpop.f32.mrf.mxu3 }
 0x194   : > { %v1082_v53 = vadd.f32 %v1081_v25, %v965_v21 }
 0x19a   : > { %v971_v36 = vpop.f32.mrf.mxu2 }
 0x19b   : > { %v1084_v34 = vpop.f32.mrf.mxu3 }
 0x19c   : > { %v1085_v50 = vadd.f32 %v1084_v34, %v968_v26  ;;  %v1330_v34 = vld [vmem:[%s2243_s11] sm:$0xff] }
 0x19d   : > { %1373 = vmatpush.msrb.mxu2 %v1330_v34 }
 0x1a3   : > { %v1087_v43 = vpop.f32.mrf.mxu3 }
 0x1a4   : > { %v1088_v44 = vadd.f32 %v1087_v43, %v971_v36 }
 0x1a6   : > { %1626 = vtanh.f32 %v1088_v44 }
 0x1a7   : > { %1628 = vtanh.f32 %v1085_v50 }
 0x1a8   : > { %1630 = vtanh.f32 %v1082_v53 }
 0x1a9   : > { %1632 = vtanh.f32 %v1079_v60 }
 0x1aa   : > { %1634 = vtanh.f32 %v1076_v5 }
 0x1ab   : > { %1636 = vtanh.f32 %v1073_v47 }
 0x1ac   : > { %v1627_v59 = vpop.eup %1626  ;;  %1638 = vtanh.f32 %v1070_v33 }
 0x1ad   : > { %1584 = vmatpush.xpose.msk.msrb.mxu1 %vm591_vm1, %v1627_v59  ;;  %v1629_v4 = vpop.eup %1628  ;;  %1640 = vtanh.f32 %v1067_v63 }
 0x1ae   : > { %v1631_v42 = vpop.eup %1630  ;;  %1642 = vtanh.f32 %v1064_v54 }
 0x1af   : > { %v1633_v36 = vpop.eup %1632  ;;  %1644 = vtanh.f32 %v1061_v45 }
 0x1b0   : > { %v1635_v21 = vpop.eup %1634  ;;  %1646 = vtanh.f32 %v1058_v38 }
 0x1b1   : > { %1585 = vmatpush.xpose.msk.msrb.mxu1 %vm591_vm1, %v1629_v4  ;;  %v1637_v17 = vpop.eup %1636  ;;  %1648 = vtanh.f32 %v2087_v27  ;;  %v566_v4 = vld [vmem:[#allocation3] sm:$0x3] }
 0x1b2   : > { %v1639_v20 = vpop.eup %1638  ;;  %1650 = vtanh.f32 %v2085_v22 }
 0x1b3   : > { %v1641_v15 = vpop.eup %1640  ;;  %1652 = vtanh.f32 %v2083_v35  ;;  %v1106_v35 = vld [vmem:[%s2239_s7] sm:$0x1] }
 0x1b4   : > { %1654 = vtanh.f32 %v2081_v16  ;;  %v1224_v16 = vld [vmem:[%s2240_s8] sm:$0xff] }
 0x1b5   : > { %1586 = vmatpush.xpose.msk.msrb.mxu1 %vm591_vm1, %v1631_v42  ;;  %v1643_v42 = vpop.eup %1642  ;;  %1656 = vtanh.f32 %v2079_v10 }
 0x1b6   : > { %v1645_v47 = vpop.eup %1644 }
 0x1b7   : > { %v1647_v33 = vpop.eup %1646 }
 0x1b8   : > { %v1649_v63 = vpop.eup %1648 }
 0x1b9   : > { %1587 = vmatpush.xpose.msk.msrb.mxu1 %vm591_vm1, %v1633_v36  ;;  %v1651_v45 = vpop.eup %1650 }
 0x1ba   : > { %v1653_v38 = vpop.eup %1652 }
 0x1bb   : > { %v1655_v27 = vpop.eup %1654 }
 0x1bc   : > { %v1657_v54 = vpop.eup %1656 }
 0x1bd   : > { %1588 = vmatpush.xpose.msk.msrb.mxu1 %vm591_vm1, %v1635_v21 }
 0x1c1   : > { %1589 = vmatpush.xpose.msk.msrb.mxu1 %vm591_vm1, %v1637_v17 }
 0x1c5   : > { %1590 = vmatpush.xpose.msk.msrb.mxu1 %vm591_vm1, %v1639_v20 }
 0x1c9   : > { %1591 = vmatpush.xpose.msk.msrb.mxu1 %vm591_vm1, %v1641_v15 }
 0x1cd   : > { %1592 = vmatpush.xpose.msk.msrb.mxu1 %vm591_vm1, %v1643_v42 }
 0x1d1   : > { %1593 = vmatpush.xpose.msk.msrb.mxu1 %vm591_vm1, %v1645_v47 }
 0x1d5   : > { %1594 = vmatpush.xpose.msk.msrb.mxu1 %vm591_vm1, %v1647_v33 }
 0x1d9   : > { %1595 = vmatpush.xpose.msk.msrb.mxu1 %vm591_vm1, %v1649_v63 }
 0x1dd   : > { %1596 = vmatpush.xpose.msk.msrb.mxu1 %vm591_vm1, %v1651_v45 }
 0x1e1   : > { %1597 = vmatpush.xpose.msk.msrb.mxu1 %vm591_vm1, %v1653_v38 }
 0x1e5   : > { %1598 = vmatpush.xpose.msk.msrb.mxu1 %vm591_vm1, %v1655_v27 }
 0x1e9   : > { %1599 = vmatpush.xpose.msk.msrb.mxu1 %vm591_vm1, %v1657_v54 }
 0x1ec   : > { %1600 = vmatmul.msk.f32.vlgmr.msrb.gmra.mxu1 %vm591_vm1, %v1106_v35 }
 0x1ed   : > { %1204 = vmatpush.msra.mxu1 %v720_v32  ;;  %v1225_v32 = vld [vmem:[%s2240_s8 + $0x8] sm:$0xff] }
 0x1ef   : > { %1205 = vmatpush.msra.mxu1 %v719_v1 }
 0x1f1   : > { %1206 = vmatpush.msra.mxu1 %v718_v58 }
 0x1f3   : > { %1207 = vmatpush.msra.mxu1 %v717_v49 }
 0x1f5   : > { %1208 = vmatpush.msra.mxu1 %v716_v40 }
 0x1f7   : > { %1209 = vmatpush.msra.mxu1 %v715_v30 }
 0x1f9   : > { %1210 = vmatpush.msra.mxu1 %v714_v24  ;;  %v1226_v24 = vld [vmem:[%s2241_s9] sm:$0xff] }
 0x1fb   : > { %1211 = vmatpush.msra.mxu1 %v713_v19  ;;  %v1227_v19 = vld [vmem:[%s2241_s9 + $0x8] sm:$0xff] }
 0x1fd   : > { %1212 = vmatpush.msra.mxu1 %v712_v14  ;;  %v1228_v14 = vld [vmem:[%s2241_s9 + $0x10] sm:$0xff] }
 0x1ff   : > { %1213 = vmatpush.msra.mxu1 %v711_v8 }
 0x201   : > { %1214 = vmatpush.msra.mxu1 %v710_v3  ;;  %v728_v3 = vmul.u32 49, %v727_v7 }
 0x203   : > { %1215 = vmatpush.msra.mxu1 %v709_v62  ;;  %vm729_vm2 = vcmp.lt.s32.totalorder %v1866_v28, %v728_v3  ;;  %v1229_v28 = vld [vmem:[%s2241_s9 + $0x18] sm:$0xff] }
 0x204   : > { %vm730_vm3 = vmand %vm726_vm6, %vm729_vm2 }
 0x205   : > { %1216 = vmatpush.msra.mxu1 %v708_v57 }
 0x207   : > { %1217 = vmatpush.msra.mxu1 %v707_v52 }
 0x209   : > { %1218 = vmatpush.msra.mxu1 %v2261_v18 }
 0x20b   : > { %1219 = vmatpush.msra.mxu1 %v2262_v13 }
 0x20d   : > { %1242 = vmatpush.msrb.mxu1 %v1229_v28  ;;  %v1384_v28 = vld [vmem:[%s2246_s14] sm:$0xff] }
 0x20f   : > { %1243 = vmatpush.msrb.mxu1 %v1228_v14 }
 0x211   : > { %1244 = vmatpush.msrb.mxu1 %v1227_v19  ;;  %v1624_v19 = vld [vmem:[%s2263_s22] ss:$0 sm:$0xff] }
 0x213   : > { %1245 = vmatpush.msrb.mxu1 %v1226_v24 }
 0x269   : > { %v1175_v56 = vpop.f32.mrf.mxu1 }
 0x26a   : > { %v1178_v57 = vperm.slane %v1175_v56, 0  ;;  %v1335_v56 = vld [vmem:[%s2244_s12 + $0x18] sm:$0xff] }
 0x26c   : > { %v1179_v51 = vsel %vm730_vm3, %v1178_v57, -1e+30  ;;  %v1334_v57 = vld [vmem:[%s2244_s12 + $0x10] sm:$0xff] }
 0x26d   : > { %v1180_v52 = vsel %vm905_vm5, %v1179_v51, -inf }
 0x26e   : > { %1181 = vmax.xlane.f32.xlu0 %v1180_v52  ;;  %v1332_v52 = vld [vmem:[%s2244_s12] sm:$0xff] }
 0x2e1   : > { %v1182_v46 = vpop.xlane.xlu0 %1181 }
 0x2e2   : > { %v1183_v61 = vsub.f32 %v1179_v51, %v1182_v46  ;;  %v1333_v51 = vld [vmem:[%s2244_s12 + $0x8] sm:$0xff] }
 0x2e4   : > { %v1184_v41 = vmul.f32 1.442695, %v1183_v61 }
 0x2e6   : > { %1658 = vpow2.f32 %v1184_v41 }
 0x2ec   : > { %v1659_v62 = vpop.eup %1658 }
 0x2ed   : > { %v1186_v8 = vsel %vm905_vm5, %v1659_v62, 0.0 }
 0x2ee   : > { %1187 = vadd.xlane.f32.xlu0 %v1186_v8  ;;  %v1386_v8 = vld [vmem:[%s2246_s14 + $0x10] sm:$0xff] }
 0x361   : > { %v1188_v31 = vpop.xlane.xlu0 %1187 }
 0x362   : > { %1660 = vrcp.f32 %v1188_v31  ;;  %v1200_v40 = vand.u32 2147483648, %v1188_v31  ;;  %v1198_v49 = vand.u32 2147483647, %v1188_v31  ;;  %vm1194_vm7 = vweird.f32 %v1188_v31 }
 0x364   : > { %v1201_v58 = vor.u32 1.1754944e-38, %v1200_v40  ;;  %vm1199_vm10 = vcmp.eq.f32.partialorder %v1198_v49, 8.507059e+37  ;;  %v1625_v40 = vld [vmem:[%s2264_s28] ss:$0 sm:$0xff] }
 0x368   : > { %v1661_v29 = vpop.eup %1660 }
 0x369   : > { %v1190_v30 = vmul.f32 %v1661_v29, %v1188_v31  ;;  %vm1195_vm4 = vweird.f32 %v1661_v29  ;;  %v1385_v31 = vld [vmem:[%s2246_s14 + $0x8] sm:$0xff] }
 0x36a   : > { %vm1196_vm8 = vmor %vm1194_vm7, %vm1195_vm4 }
 0x36b   : > { %v1191_v39 = vsub.f32 1.0, %v1190_v30 }
 0x36d   : > { %v1192_v48 = vmul.f32 %v1661_v29, %v1191_v39 }
 0x36f   : > { %v1193_v55 = vadd.f32 %v1661_v29, %v1192_v48 }
 0x371   : > { %v1197_v0 = vsel %vm1196_vm8, %v1661_v29, %v1193_v55 }
 0x372   : > { %v1202_v1 = vsel %vm1199_vm10, %v1201_v58, %v1197_v0 }
 0x373   : > { %v1203_v6 = vmul.f32 %v1659_v62, %v1202_v1  ;;  %v1387_v62 = vld [vmem:[%s2246_s14 + $0x18] sm:$0xff] }
 0x374   : > { %1407 = vmatpush.msrb.mxu3 %v1387_v62 }
 0x375   : > { %1220 = vmatmul.f32.vlgmr.msra.gmra.mxu1 %v1203_v6  ;;  %v1423_v10 = vsel %vm905_vm5, %v1203_v6, 0.0 }
 0x376   : > { %v1424_v22 = vrot.slane %v1423_v10, 4  ;;  %1267 = vmatpush.msra.mxu1 %v1225_v32  ;;  %1408 = vmatpush.msrb.mxu3 %v1386_v8 }
 0x378   : > { %v1425_v9 = vadd.f32 %v1424_v22, %v1423_v10  ;;  %1268 = vmatpush.msra.mxu1 %v1224_v16  ;;  %1409 = vmatpush.msrb.mxu3 %v1385_v31 }
 0x37a   : > { %v1426_v12 = vrot.slane %v1425_v9, 2  ;;  %1410 = vmatpush.msrb.mxu3 %v1384_v28 }
 0x37c   : > { %v1427_v37 = vadd.f32 %v1426_v12, %v1425_v9 }
 0x37d   : > { %1601 = vmatmul.msk.f32.vlgmr.msrb.gmra.mxu1 %vm591_vm1, %v1829_v11  ;;  %v1623_v11 = vld [vmem:[%s2242_s10] ss:$0 sm:$0xff] }
 0x37e   : > { %v1428_v25 = vrot.slane %v1427_v37, 1  ;;  %1350 = vmatpush.msrb.mxu1 %v1335_v56 }
 0x380   : > { %v1429_v26 = vadd.f32 %v1428_v25, %v1427_v37  ;;  %1351 = vmatpush.msrb.mxu1 %v1334_v57 }
 0x382   : > { %1430 = vst [vmem:[%s555_s23] sm:$0x1] %v1429_v26  ;;  %s1680_s23 = smov 32   ;;  %1352 = vmatpush.msrb.mxu1 %v1333_v51 }
 0x384   : > { %1353 = vmatpush.msrb.mxu1 %v1332_v52 }
 0x3f2   : > { %v1221_v43 = vpop.f32.mrf.mxu1 }
 0x3f3   : > { %1602 = vmatmul.msk.f32.vlgmr.msra.gmra.mxu1 %vm976_vm9, %v1221_v43  ;;  %1605 = vmatmul.msk.f32.vlgmr.msrb.gmra.mxu2 %vm976_vm9, %v1221_v43 }
 0x3fa   : > { %v1247_v44 = vpop.f32.mrf.mxu1 }
 0x470   : > { %v1270_v50 = vpop.f32.mrf.mxu1 }
 0x471   : > { %v1271_v53 = vadd.f32 %v1270_v50, %v1247_v44 }
 0x473   : > { %v1277_v59 = vadd.f32 %v1623_v11, %v1271_v53 }
 0x475   : > { %1662 = vtanh.f32 %v1277_v59  ;;  %v1603_v5 = vmul.f32 -1.442695, %v1277_v59 }
 0x476   : > { %v1375_v23 = vpop.f32.mrf.mxu2 }
 0x477   : > { %1664 = vpow2.f32 %v1603_v5 }
 0x47b   : > { %v1663_v60 = vpop.eup %1662 }
 0x47c   : > { %1304 = vrot.lane.b32.xlu1 %v1663_v60, %s1679_s26 }
 0x47d   : > { %v1665_v36 = vpop.eup %1664 }
 0x47e   : > { %v1281_v21 = vadd.f32 1.0, %v1665_v36 }
 0x480   : > { %1666 = vrcp.f32 %v1281_v21  ;;  %v1293_v33 = vand.u32 2147483648, %v1281_v21  ;;  %vm1287_vm9 = vweird.f32 %v1281_v21  ;;  %v1291_v63 = vand.u32 2147483647, %v1281_v21 }
 0x482   : > { %v1294_v38 = vor.u32 1.1754944e-38, %v1293_v33  ;;  %vm1292_vm12 = vcmp.eq.f32.partialorder %v1291_v63, 8.507059e+37 }
 0x484   : > { %1299 = vrot.lane.b32.xlu1 %v566_v4, %s1680_s23 }
 0x486   : > { %v1667_v17 = vpop.eup %1666 }
 0x487   : > { %v1283_v20 = vmul.f32 %v1667_v17, %v1281_v21  ;;  %vm1288_vm5 = vweird.f32 %v1667_v17 }
 0x488   : > { %vm1289_vm11 = vmor %vm1287_vm9, %vm1288_vm5 }
 0x489   : > { %v1284_v15 = vsub.f32 1.0, %v1283_v20 }
 0x48b   : > { %v1285_v42 = vmul.f32 %v1667_v17, %v1284_v15 }
 0x48d   : > { %v1286_v47 = vadd.f32 %v1667_v17, %v1285_v42 }
 0x48f   : > { %v1290_v45 = vsel %vm1289_vm11, %v1667_v17, %v1286_v47 }
 0x490   : > { %v1295_v54 = vsel %vm1292_vm12, %v1294_v38, %v1290_v45 }
 0x4ee   : > { %v1305_v27 = vpop.permute.xlu1 %1304 }
 0x4ef   : > { %v1307_v35 = vmul.f32 %v1305_v27, %v1295_v54 }
 0x4f1   : > { %1309 = vrot.lane.b32.xlu2 %v1307_v35, %s1680_s23 }
 0x4f6   : > { %v1300_v18 = vpop.permute.xlu1 %1299 }
 0x4f7   : > { %v1302_v13 = vmul.f32 %v1300_v18, %v1295_v54 }
 0x54b   : > { %v1310_v7 = vpop.permute.xlu2 %1309 }
 0x54c   : > { %v1312_v2 = vadd.f32 %v1310_v7, %v1302_v13 }
 0x54e   : > { %1668 = vtanh.f32 %v1312_v2 }
 0x554   : > { %v1669_v3 = vpop.eup %1668 }
 0x555   : > { %1315 = vrot.lane.b32.xlu2 %v1669_v3, %s1679_s26 }
 0x55d   : > { %1326 = vrot.lane.b32.xlu2 %v1312_v2, %s1681_s13 }
 0x5af   : > { %v1316_v46 = vpop.permute.xlu2 %1315 }
 0x5b0   : > { %v1318_v61 = vmul.f32 %v1316_v46, %v1295_v54 }
 0x5b2   : > { %1320 = vrot.lane.b32.xlu0 %v1318_v61, %s1680_s23 }
 0x5b7   : > { %v1327_v41 = vpop.permute.xlu2 %1326 }
 0x5b8   : > { %1329 = vst.msk [vmem:[#allocation3] sm:$0x3] %vm1323_vm13, %v1327_v41 }
 0x624   : > { %v1321_v14 = vpop.permute.xlu0 %1320 }
 0x625   : > { %1324 = vst.msk [vmem:[#allocation2] sm:$0x3] %vm1323_vm13, %v1321_v14  ;;  %1604 = vmatmul.msk.f32.vlgmr.msrb.gmra.mxu1 %vm591_vm1, %v1321_v14  ;;  %v1419_v55 = vsel %vm591_vm1, %v1321_v14, %v1312_v2 }
 0x6a2   : > { %v1355_v24 = vpop.f32.mrf.mxu1 }
 0x6a3   : > { %v1376_v29 = vadd.f32 %v1375_v23, %v1355_v24 }
 0x6a5   : > { %v1382_v30 = vadd.f32 %v1624_v19, %v1376_v29 }
 0x6a7   : > { %v1383_v39 = vmax.f32 %v1382_v30, 0.0 }
 0x6a9   : > { %1606 = vmatmul.msk.f32.vlgmr.msrb.gmra.mxu3 %vm591_vm1, %v1383_v39 }
 0x72c   : > { %v1412_v48 = vpop.f32.mrf.mxu3 }
 0x72d   : > { %v1413_v49 = vadd.f32 %v1625_v40, %v1412_v48 }
 0x72f   : > { %1416 = vrot.lane.b32.xlu1 %v1413_v49, %s1679_s26 }
 0x7a1   : > { %v1417_v58 = vpop.permute.xlu1 %1416 }
 0x7a2   : > { %v1421_v0 = vsel %vm1420_vm14, %v1419_v55, %v1417_v58 }
 0x7a3   : > { %1422 = vst [vmem:[%s1792_s20] sm:$0x3] %v1421_v0 }
 0x7a4 PF: > { %s2265_s30 = sld [smem:[#allocation4_spill]] }
 0x7aa   : > { %s28_s24 = sadd.s32 1, %s2265_s30  }
 0x7ab   : > { %p25_p5 = scmp.ge.s32.totalorder %s28_s24, 6  }
 0x7ad   :  { %27 = sbr.rel (!%p25_p5) target bundleno = 5 (0x5), region = 130 }

</bundles_post_ra>
